<compile_context>
chip_gen: v6e
topology: v6e:2x2x1
jax: 0.10.0
libtpu: 0.0.40
codegen_flags: <defaults>
</compile_context>

<pallas_src>
import functools

import jax
import jax.numpy as jnp
from jax.experimental import pallas as pl
from jax.experimental.pallas import tpu as pltpu


def _round_up(x, m):
    return ((x + m - 1) // m) * m


# ---------------------------------------------------------------------------
# Kernel 1: pointwise conv stack (k->64->128->1024, ReLU) + max-pool over points.
# ---------------------------------------------------------------------------
def _conv_pool_kernel(x_ref, w1_ref, b1_ref, w2_ref, b2_ref, w3_ref, b3_ref,
                      pooled_ref, acc_ref, *, tile_n):
    n = pl.program_id(2)

    x = x_ref[...]                                                   # (TN, KP) bf16
    h = jnp.maximum(
        jnp.dot(x, w1_ref[...], preferred_element_type=jnp.float32)
        + b1_ref[...], 0.0)                                          # (TN, 64)  f32
    h = jnp.maximum(
        jnp.dot(h.astype(jnp.bfloat16), w2_ref[...],
                preferred_element_type=jnp.float32) + b2_ref[...], 0.0)  # (TN, 128)
    h = jnp.maximum(
        jnp.dot(h.astype(jnp.bfloat16), w3_ref[...],
                preferred_element_type=jnp.float32) + b3_ref[...], 0.0)  # (TN, 1024)

    # Per-tile partial max folded into an (8, 1024) accumulator.  The reshape
    # keeps whole (8, 128) sublane groups, so the reduce over the leading axis
    # is pure elementwise VPU work; the cross-sublane reduce happens only once
    # per batch (last tile below).
    hm = jnp.max(h.reshape(tile_n // 8, 8, h.shape[-1]), axis=0)     # (8, 1024)

    @pl.when(n == 0)
    def _():
        acc_ref[...] = jnp.full_like(acc_ref, -jnp.inf)

    acc_ref[...] = jnp.maximum(acc_ref[...], hm)

    @pl.when(n == pl.num_programs(2) - 1)
    def _():
        pooled_ref[...] = jnp.max(acc_ref[...], axis=0, keepdims=True)


# ---------------------------------------------------------------------------
# Kernel 2: MLP head (1024->512->256->k*k), K-tiled over the 1024 contraction.
# ---------------------------------------------------------------------------
def _head_kernel(p_ref, w4_ref, b4_ref, w5_ref, b5_ref, w6_ref, b6_ref,
                 o_ref, acc_ref):
    j = pl.program_id(0)

    @pl.when(j == 0)
    def _():
        acc_ref[...] = jnp.zeros_like(acc_ref)

    acc_ref[...] += jnp.dot(p_ref[...], w4_ref[...],
                            preferred_element_type=jnp.float32)       # (Bp, 512)

    @pl.when(j == pl.num_programs(0) - 1)
    def _():
        g = jnp.maximum(acc_ref[...] + b4_ref[...], 0.0)              # (Bp, 512)
        g = jnp.maximum(
            jnp.dot(g.astype(jnp.bfloat16), w5_ref[...],
                    preferred_element_type=jnp.float32) + b5_ref[...], 0.0)  # (Bp,256)
        o_ref[...] = (jnp.dot(g.astype(jnp.bfloat16), w6_ref[...],
                              preferred_element_type=jnp.float32)
                      + b6_ref[...])                                  # (Bp, OUTP)


def init_params(key, k):
    """Deterministic synthetic weights, PyTorch-like U(-1/sqrt(fan_in), ...)."""
    dims = [(k, 64), (64, 128), (128, 1024), (1024, 512), (512, 256),
            (256, k * k)]
    params = []
    for fan_in, fan_out in dims:
        key, kw, kb = jax.random.split(key, 3)
        bound = 1.0 / float(fan_in) ** 0.5
        w = jax.random.uniform(kw, (fan_in, fan_out), jnp.float32,
                               -bound, bound)
        b = jax.random.uniform(kb, (1, fan_out), jnp.float32, -bound, bound)
        params += [w, b]
    return params


def tnet_forward(x, params, k, numpoints, tile_n=512):
    B, C, N = x.shape
    assert C == k, "input channel dim must equal k"
    assert N == numpoints, "max_pool1d(kernel_size=numpoints) needs N == numpoints"

    (w1, b1, w2, b2, w3, b3, w4, b4, w5, b5, w6, b6) = params
    kk = k * k
    bf = jnp.bfloat16

    # ---- host-side layout prep (conv stack) --------------------------------
    # Points-major layout (B, N, k); pad channels with zeros to a sublane
    # multiple (>=8) so the tiny k=3/4 contraction is well formed.
    # TODO(synk): for very large B*N, reading (kp, tn) blocks directly from the
    # original (B, k, N) layout with an in-kernel transpose would avoid this
    # extra HBM round trip of the input.
    kp = max(8, _round_up(k, 8))
    x_t = jnp.transpose(x, (0, 2, 1))                                # (B, N, k)
    x_t = jnp.pad(x_t, ((0, 0), (0, 0), (0, kp - k)))                # zero channels

    tn = min(tile_n, _round_up(N, 8))
    nt = pl.cdiv(N, tn)
    # v7x: with an odd/unit batch, split the point range into two parallel
    # halves so both TensorCores get work; combined outside with jnp.max.
    n_split = 2 if (B % 2 == 1 and nt % 2 == 0) else 1
    n_pad = _round_up(N, n_split * tn)
    nt_half = n_pad // (n_split * tn)
    # Edge-pad the point axis (duplicate the last real point): padding can
    # never change the max, so the kernel needs no masking at all.
    x_t = jnp.pad(x_t, ((0, 0), (0, n_pad - N), (0, 0)), mode="edge")
    x_t = x_t.astype(bf)

    w1p = jnp.pad(w1, ((0, kp - k), (0, 0))).astype(bf)              # (kp, 64)
    w2b = w2.astype(bf)
    w3b = w3.astype(bf)

    def wspec(arr):
        return pl.BlockSpec(arr.shape, lambda s, b, n: (0, 0))

    pooled4 = pl.pallas_call(
        functools.partial(_conv_pool_kernel, tile_n=tn),
        out_shape=jax.ShapeDtypeStruct((n_split, B, 1, 1024), jnp.float32),
        grid=(n_split, B, nt_half),
        in_specs=[
            pl.BlockSpec((pl.Squeezed(), tn, kp),
                         lambda s, b, n: (b, s * nt_half + n, 0)),
            wspec(w1p), wspec(b1),
            wspec(w2b), wspec(b2),
            wspec(w3b), wspec(b3),
        ],
        out_specs=pl.BlockSpec((pl.Squeezed(), pl.Squeezed(), 1, 1024),
                               lambda s, b, n: (s, b, 0, 0)),
        scratch_shapes=[pltpu.VMEM((8, 1024), jnp.float32)],
        compiler_params=pltpu.CompilerParams(
            dimension_semantics=("parallel", "parallel", "arbitrary")),
    )(x_t, w1p, b1, w2b, b2, w3b, b3)

    pooled = jnp.max(pooled4, axis=0).reshape(B, 1024)               # (B, 1024) f32

    # ---- MLP head: K-tiled pipeline, bf16 weights, lane-dense output -------
    Bp = max(8, _round_up(B, 8))
    out_pad = _round_up(kk, 128)
    tk = 256

    p_pad = jnp.pad(pooled.astype(bf), ((0, Bp - B), (0, 0)))        # (Bp, 1024)
    w4b = w4.astype(bf)
    w5b = w5.astype(bf)
    w6p = jnp.pad(w6, ((0, 0), (0, out_pad - kk))).astype(bf)        # (256, OUTP)
    bias6 = b6 + jnp.eye(k, dtype=jnp.float32).reshape(1, kk)        # fold identity
    bias6 = jnp.pad(bias6, ((0, 0), (0, out_pad - kk)))              # (1, OUTP) f32

    def full2(arr):
        return pl.BlockSpec(arr.shape, lambda j: (0, 0))

    head_out = pl.pallas_call(
        _head_kernel,
        out_shape=jax.ShapeDtypeStruct((Bp, out_pad), jnp.float32),
        grid=(1024 // tk,),
        in_specs=[
            pl.BlockSpec((Bp, tk), lambda j: (0, j)),
            pl.BlockSpec((tk, 512), lambda j: (j, 0)),
            full2(b4),
            full2(w5b), full2(b5),
            full2(w6p), full2(bias6),
        ],
        out_specs=pl.BlockSpec((Bp, out_pad), lambda j: (0, 0)),
        scratch_shapes=[pltpu.VMEM((Bp, 512), jnp.float32)],
        compiler_params=pltpu.CompilerParams(
            dimension_semantics=("arbitrary",)),
    )(p_pad, w4b, b4, w5b, b5, w6p, bias6)

    return head_out[:B, :kk].reshape(B, k, k)


def tnet_ref(x, params, k):
    """Pure-JAX reference using the same bf16-operand / f32-accumulate matmuls."""
    w1, b1, w2, b2, w3, b3, w4, b4, w5, b5, w6, b6 = params
    bf = jnp.bfloat16

    def mm(a, w):
        return jnp.dot(a.astype(bf), w.astype(bf),
                       preferred_element_type=jnp.float32)

    xt = jnp.transpose(x, (0, 2, 1))
    h = jax.nn.relu(mm(xt, w1) + b1)
    h = jax.nn.relu(mm(h, w2) + b2)
    h = jax.nn.relu(mm(h, w3) + b3)
    p = jnp.max(h, axis=1)
    g = jax.nn.relu(mm(p, w4) + b4)
    g = jax.nn.relu(mm(g, w5) + b5)
    o = mm(g, w6) + b6 + jnp.eye(k, dtype=jnp.float32).reshape(1, k * k)
    return o.reshape(-1, k, k)


if __name__ == "__main__":
    key = jax.random.PRNGKey(0)
    # Config 1: B even, N not a multiple of the tile (edge-padding path).
    # Config 2: B == 1, N large enough for two point tiles (v7x split path).
    for (B, k, numpoints) in [(2, 4, 200), (1, 3, 1000)]:
        key, kx, kparam = jax.random.split(key, 3)
        x = jax.random.normal(kx, (B, k, numpoints), dtype=jnp.float32)
        params = init_params(kparam, k)

        out = jax.block_until_ready(tnet_forward(x, params, k, numpoints))
        ref = tnet_ref(x, params, k)

        assert out.shape == (B, k, k)
        assert jnp.allclose(out, ref, atol=2e-3, rtol=2e-3), \
            f"mismatch vs reference for B={B}, k={k}, N={numpoints}"

    print("KERNEL_OK")
</pallas_src>

<mosaic_0001>
module attributes {stable_mosaic.version = 11 : i64} {
  func.func @_conv_pool_kernel(%arg0: i32, %arg1: i32, %arg2: i32, %arg3: memref<1x200x8xbf16, #tpu.memory_space<vmem>>, %arg4: memref<8x64xbf16, #tpu.memory_space<vmem>>, %arg5: memref<1x64xf32, #tpu.memory_space<vmem>>, %arg6: memref<64x128xbf16, #tpu.memory_space<vmem>>, %arg7: memref<1x128xf32, #tpu.memory_space<vmem>>, %arg8: memref<128x1024xbf16, #tpu.memory_space<vmem>>, %arg9: memref<1x1024xf32, #tpu.memory_space<vmem>>, %arg10: memref<1x1x1x1024xf32, #tpu.memory_space<vmem>>, %arg11: memref<8x1024xf32, #tpu.memory_space<vmem>>) attributes {dimension_semantics = [#tpu.dimension_semantics<parallel>, #tpu.dimension_semantics<parallel>, #tpu.dimension_semantics<arbitrary>], iteration_bounds = array<i64: 1, 2, 1>, scalar_prefetch = 0 : i64, scratch_operands = 1 : i64, tpu.core_type = #tpu.core_type<tc>, window_params = [{transform_indices = @transform_0, window_bounds = array<i64: 1, 200, 8>}, {pipeline_mode = #tpu.pipeline_mode<synchronous>, transform_indices = @transform_1, window_bounds = array<i64: 8, 64>}, {pipeline_mode = #tpu.pipeline_mode<synchronous>, transform_indices = @transform_2, window_bounds = array<i64: 1, 64>}, {pipeline_mode = #tpu.pipeline_mode<synchronous>, transform_indices = @transform_3, window_bounds = array<i64: 64, 128>}, {pipeline_mode = #tpu.pipeline_mode<synchronous>, transform_indices = @transform_4, window_bounds = array<i64: 1, 128>}, {pipeline_mode = #tpu.pipeline_mode<synchronous>, transform_indices = @transform_5, window_bounds = array<i64: 128, 1024>}, {pipeline_mode = #tpu.pipeline_mode<synchronous>, transform_indices = @transform_6, window_bounds = array<i64: 1, 1024>}, {transform_indices = @transform_7, window_bounds = array<i64: 1, 1, 1, 1024>}]} {
    %c0 = arith.constant 0 : index
    %c0_0 = arith.constant 0 : index
    %c0_1 = arith.constant 0 : index
    %0 = vector.load %arg3[%c0, %c0_0, %c0_1] : memref<1x200x8xbf16, #tpu.memory_space<vmem>>, vector<1x200x8xbf16>
    %1 = vector.shape_cast %0 : vector<1x200x8xbf16> to vector<200x8xbf16>
    %c0_2 = arith.constant 0 : index
    %c0_3 = arith.constant 0 : index
    %2 = vector.load %arg4[%c0_2, %c0_3] : memref<8x64xbf16, #tpu.memory_space<vmem>>, vector<8x64xbf16>
    %cst = arith.constant dense<0.000000e+00> : vector<200x64xf32>
    %3 = tpu.matmul %1, %2, %cst {dimension_numbers = #tpu.dot_dimension_numbers<[1], [0], [0], [1], [0, 0, 1, 1], [], []>} : vector<200x8xbf16>, vector<8x64xbf16>, vector<200x64xf32> -> vector<200x64xf32>
    %c0_4 = arith.constant 0 : index
    %c0_5 = arith.constant 0 : index
    %4 = vector.load %arg5[%c0_4, %c0_5] : memref<1x64xf32, #tpu.memory_space<vmem>>, vector<1x64xf32>
    %5 = vector.broadcast %4 : vector<1x64xf32> to vector<200x64xf32>
    %6 = arith.addf %3, %5 : vector<200x64xf32>
    %cst_6 = arith.constant 0.000000e+00 : f32
    %7 = vector.broadcast %cst_6 : f32 to vector<200x64xf32>
    %8 = arith.maximumf %6, %7 : vector<200x64xf32>
    %9 = arith.truncf %8 : vector<200x64xf32> to vector<200x64xbf16>
    %c0_7 = arith.constant 0 : index
    %c0_8 = arith.constant 0 : index
    %10 = vector.load %arg6[%c0_7, %c0_8] : memref<64x128xbf16, #tpu.memory_space<vmem>>, vector<64x128xbf16>
    %cst_9 = arith.constant dense<0.000000e+00> : vector<200x128xf32>
    %11 = tpu.matmul %9, %10, %cst_9 {dimension_numbers = #tpu.dot_dimension_numbers<[1], [0], [0], [1], [0, 0, 1, 1], [], []>} : vector<200x64xbf16>, vector<64x128xbf16>, vector<200x128xf32> -> vector<200x128xf32>
    %c0_10 = arith.constant 0 : index
    %c0_11 = arith.constant 0 : index
    %12 = vector.load %arg7[%c0_10, %c0_11] : memref<1x128xf32, #tpu.memory_space<vmem>>, vector<1x128xf32>
    %13 = vector.broadcast %12 : vector<1x128xf32> to vector<200x128xf32>
    %14 = arith.addf %11, %13 : vector<200x128xf32>
    %cst_12 = arith.constant 0.000000e+00 : f32
    %15 = vector.broadcast %cst_12 : f32 to vector<200x128xf32>
    %16 = arith.maximumf %14, %15 : vector<200x128xf32>
    %17 = arith.truncf %16 : vector<200x128xf32> to vector<200x128xbf16>
    %c0_13 = arith.constant 0 : index
    %c0_14 = arith.constant 0 : index
    %18 = vector.load %arg8[%c0_13, %c0_14] : memref<128x1024xbf16, #tpu.memory_space<vmem>>, vector<128x1024xbf16>
    %cst_15 = arith.constant dense<0.000000e+00> : vector<200x1024xf32>
    %19 = tpu.matmul %17, %18, %cst_15 {dimension_numbers = #tpu.dot_dimension_numbers<[1], [0], [0], [1], [0, 0, 1, 1], [], []>} : vector<200x128xbf16>, vector<128x1024xbf16>, vector<200x1024xf32> -> vector<200x1024xf32>
    %c0_16 = arith.constant 0 : index
    %c0_17 = arith.constant 0 : index
    %20 = vector.load %arg9[%c0_16, %c0_17] : memref<1x1024xf32, #tpu.memory_space<vmem>>, vector<1x1024xf32>
    %21 = vector.broadcast %20 : vector<1x1024xf32> to vector<200x1024xf32>
    %22 = arith.addf %19, %21 : vector<200x1024xf32>
    %cst_18 = arith.constant 0.000000e+00 : f32
    %23 = vector.broadcast %cst_18 : f32 to vector<200x1024xf32>
    %24 = arith.maximumf %22, %23 : vector<200x1024xf32>
    %25 = vector.shape_cast %24 : vector<200x1024xf32> to vector<25x8x1024xf32>
    %cst_19 = arith.constant dense<0xFF800000> : vector<8x1024xf32>
    %26 = vector.multi_reduction <maximumf>, %25, %cst_19 [0] : vector<25x8x1024xf32> to vector<8x1024xf32>
    %c0_i32 = arith.constant 0 : i32
    %27 = arith.cmpi eq, %arg2, %c0_i32 : i32
    %28 = arith.extui %27 : i1 to i32
    %c0_i32_20 = arith.constant 0 : i32
    %29 = arith.cmpi ne, %28, %c0_i32_20 : i32
    scf.if %29 {
      %cst_27 = arith.constant 0xFF800000 : f32
      %36 = vector.broadcast %cst_27 : f32 to vector<8x1024xf32>
      %c0_28 = arith.constant 0 : index
      %c0_29 = arith.constant 0 : index
      %37 = vector.load %arg11[%c0_28, %c0_29] : memref<8x1024xf32, #tpu.memory_space<vmem>>, vector<8x1024xf32>
      tpu.vector_store %arg11[%c0_28, %c0_29], %36 {strides = array<i32>} : memref<8x1024xf32, #tpu.memory_space<vmem>>, vector<8x1024xf32>,
    } else {
    }
    %c0_21 = arith.constant 0 : index
    %c0_22 = arith.constant 0 : index
    %30 = vector.load %arg11[%c0_21, %c0_22] : memref<8x1024xf32, #tpu.memory_space<vmem>>, vector<8x1024xf32>
    %31 = arith.maximumf %30, %26 : vector<8x1024xf32>
    %c0_23 = arith.constant 0 : index
    %c0_24 = arith.constant 0 : index
    %32 = vector.load %arg11[%c0_23, %c0_24] : memref<8x1024xf32, #tpu.memory_space<vmem>>, vector<8x1024xf32>
    tpu.vector_store %arg11[%c0_23, %c0_24], %31 {strides = array<i32>} : memref<8x1024xf32, #tpu.memory_space<vmem>>, vector<8x1024xf32>,
    %c0_i32_25 = arith.constant 0 : i32
    %33 = arith.cmpi eq, %arg2, %c0_i32_25 : i32
    %34 = arith.extui %33 : i1 to i32
    %c0_i32_26 = arith.constant 0 : i32
    %35 = arith.cmpi ne, %34, %c0_i32_26 : i32
    scf.if %35 {
      %c0_27 = arith.constant 0 : index
      %c0_28 = arith.constant 0 : index
      %36 = vector.load %arg11[%c0_27, %c0_28] : memref<8x1024xf32, #tpu.memory_space<vmem>>, vector<8x1024xf32>
      %cst_29 = arith.constant dense<0xFF800000> : vector<1024xf32>
      %37 = vector.multi_reduction <maximumf>, %36, %cst_29 [0] : vector<8x1024xf32> to vector<1024xf32>
      %38 = vector.shape_cast %37 : vector<1024xf32> to vector<1x1024xf32>
      %c0_30 = arith.constant 0 : index
      %c0_31 = arith.constant 0 : index
      %c0_32 = arith.constant 0 : index
      %c0_33 = arith.constant 0 : index
      %39 = vector.load %arg10[%c0_30, %c0_31, %c0_32, %c0_33] : memref<1x1x1x1024xf32, #tpu.memory_space<vmem>>, vector<1x1x1x1024xf32>
      %40 = vector.shape_cast %39 : vector<1x1x1x1024xf32> to vector<1x1024xf32>
      %41 = vector.shape_cast %38 : vector<1x1024xf32> to vector<1x1x1x1024xf32>
      tpu.vector_store %arg10[%c0_30, %c0_31, %c0_32, %c0_33], %41 {strides = array<i32>} : memref<1x1x1x1024xf32, #tpu.memory_space<vmem>>, vector<1x1x1x1024xf32>,
    } else {
    }
    return
  }
  func.func @transform_0(%arg0: i32, %arg1: i32, %arg2: i32) -> (i32, i32, i32) {
    %c1_i32 = arith.constant 1 : i32
    %0 = arith.muli %arg0, %c1_i32 : i32
    %1 = arith.addi %0, %arg2 : i32
    %c0_i32 = arith.constant 0 : i32
    %c0_i32_0 = arith.constant 0 : i32
    return %arg1, %1, %c0_i32 : i32, i32, i32
  }
  func.func @transform_1(%arg0: i32, %arg1: i32, %arg2: i32) -> (i32, i32) {
    %c0_i32 = arith.constant 0 : i32
    %c0_i32_0 = arith.constant 0 : i32
    %c0_i32_1 = arith.constant 0 : i32
    return %c0_i32, %c0_i32_0 : i32, i32
  }
  func.func @transform_2(%arg0: i32, %arg1: i32, %arg2: i32) -> (i32, i32) {
    %c0_i32 = arith.constant 0 : i32
    %c0_i32_0 = arith.constant 0 : i32
    %c0_i32_1 = arith.constant 0 : i32
    return %c0_i32, %c0_i32_0 : i32, i32
  }
  func.func @transform_3(%arg0: i32, %arg1: i32, %arg2: i32) -> (i32, i32) {
    %c0_i32 = arith.constant 0 : i32
    %c0_i32_0 = arith.constant 0 : i32
    %c0_i32_1 = arith.constant 0 : i32
    return %c0_i32, %c0_i32_0 : i32, i32
  }
  func.func @transform_4(%arg0: i32, %arg1: i32, %arg2: i32) -> (i32, i32) {
    %c0_i32 = arith.constant 0 : i32
    %c0_i32_0 = arith.constant 0 : i32
    %c0_i32_1 = arith.constant 0 : i32
    return %c0_i32, %c0_i32_0 : i32, i32
  }
  func.func @transform_5(%arg0: i32, %arg1: i32, %arg2: i32) -> (i32, i32) {
    %c0_i32 = arith.constant 0 : i32
    %c0_i32_0 = arith.constant 0 : i32
    %c0_i32_1 = arith.constant 0 : i32
    return %c0_i32, %c0_i32_0 : i32, i32
  }
  func.func @transform_6(%arg0: i32, %arg1: i32, %arg2: i32) -> (i32, i32) {
    %c0_i32 = arith.constant 0 : i32
    %c0_i32_0 = arith.constant 0 : i32
    %c0_i32_1 = arith.constant 0 : i32
    return %c0_i32, %c0_i32_0 : i32, i32
  }
  func.func @transform_7(%arg0: i32, %arg1: i32, %arg2: i32) -> (i32, i32, i32, i32) {
    %c0_i32 = arith.constant 0 : i32
    %c0_i32_0 = arith.constant 0 : i32
    %c0_i32_1 = arith.constant 0 : i32
    return %arg0, %arg1, %c0_i32, %c0_i32_0 : i32, i32, i32, i32
  }
}

</mosaic_0001>

<bundles_post_ra>
// kernel: tpu_custom_call.1
= control target key start
LH: loop header
LB: loop body
LE: loop exit
PB: predicated region body
PF: predicated region fallthrough
CT: control target
= control target key end

     0   :  { %12 = vsyncpa [#allocation4], 0  ;;  %s3933_s0 = inlined_call_operand.vmem [shape: bf16[2,200,8], index: 0, kind: input, shape index: {}]   ;;  %s3934_s1 = inlined_call_operand.vmem [shape: bf16[8,64], index: 1, kind: input, shape index: {}]   ;;  %s3935_s2 = inlined_call_operand.vmem [shape: f32[1,64], index: 2, kind: input, shape index: {}]   ;;  %s3936_s3 = inlined_call_operand.vmem [shape: bf16[64,128], index: 3, kind: input, shape index: {}]   ;;  %s3937_s4 = inlined_call_operand.vmem [shape: f32[1,128], index: 4, kind: input, shape index: {}]   ;;  %s3938_s5 = inlined_call_operand.hbm [shape: bf16[128,1024], index: 5, kind: input, shape index: {}]   ;;  %s3939_s6 = inlined_call_operand.vmem [shape: f32[1,1024], index: 6, kind: input, shape index: {}]   ;;  %s3940_s7 = inlined_call_operand.hbm [shape: f32[1,2,1,1024], index: 7, kind: output, shape index: {}]  }
   0x1   :  { %13 = vsyncpa [#allocation5], 0 }
   0x2   :  { %15 = vsyncpa [#allocation5 + $0x1], 0  ;;  %s3143_s24 = smov 0   ;;  %s3145_s25 = smov 0  }
   0x3   :  { %s3147_s26 = smov 0   ;;  %s3149_s27 = smov 0  }
   0x4   :  { %s3151_s28 = smov 0   ;;  %s3153_s29 = smov 0  }
   0x5 LB: > { %s2628_s30 = sadd.s32 4294967295, %s3093_s29   ;;  %s2629_s8 = sadd.s32 4294967294, %s3093_s29   ;;  %s3093_s29 = sphi %s3153_s29, %s21_s29   ;;  %s3089_s28 = sphi %s3151_s28, %s3949_s28   ;;  %s3085_s27 = sphi %s3149_s27, %s3948_s27   ;;  %s3081_s26 = sphi %s3147_s26, %s3947_s26   ;;  %s3077_s25 = sphi %s3145_s25, %s3946_s25   ;;  %s3073_s24 = sphi %s3143_s24, %s3945_s24  }
   0x6   : > { %s36_s9 = sadd.s32 1, %s3089_s28  ;;  %s205_s10 = sadd.s32 1, %s3081_s26 }
   0x7   : > { %p38_p0 = scmp.ge.s32.totalorder %s36_s9, 2  ;;  %p215_p1 = scmp.ne.s32.totalorder %s3081_s26, %s3077_s25 }
   0x8   : > { %p216_p2 = scmp.eq.s32.totalorder %s2628_s30, 1  ;;  %p221_p3 = scmp.ne.s32.totalorder %s3077_s25, %s3073_s24 }
   0x9   : > { %s3951_s9 = smov (%p38_p0, %s36_s9), 0  ;;  %p222_p5 = scmp.eq.s32.totalorder %s2629_s8, 1 }
   0xa   : > { %p3183_p4 = por %p216_p2, %p215_p1  ;;  %s201_s12 = ssub.s32 %s3089_s28, %s3951_s9 }
   0xb   : > { %p2630_p6 = scmp.ge.s32.totalorder %s3093_s29, 1  ;;  %p203_p7 = scmp.eq.s32.totalorder %s201_s12, 0 }
   0xc   : > { %p3190_p8 = por %p222_p5, %p221_p3  ;;  %p229_p9 = scmp.lt.s32.totalorder %s3093_s29, 3 }
   0xd   : > { %s3196_s14 = scalar_select %p203_p7, %s3081_s26, %s205_s10  }
   0xe   : > { %p3198_p10 = pnand %p2630_p6, %p229_p9  ;;  %p3202_p11 = scmp.eq.s32.totalorder %s2628_s30, 0 }
   0xf   : > { %s3095_s17 = smov [#allocation3]  }
  0x10   : > { %p2904_p12 = pneg %p3198_p10  ;;  %s253_s18 = sshll.u32 %s3095_s17, 4  ;;  %s254_s18 = int_to_ptr.vmem [resolvable:$true] %s253_s18 }
  0x11   : > { %s2998_s19 = scalar_lea.vmem %s254_s18, 8192  ;;  %p3006_p5 = scmp.lt.s32.totalorder %s254_s18, %s254_s18 }
  0x12   : > { %p2905_p13 = pnand %p3202_p11, %p2904_p12  ;;  %p2999_p1 = scmp.ne.s32.totalorder %s254_s18, %s2998_s19 }
  0x13   : > { %p3007_p6 = scmp.lt.s32.totalorder %s2998_s19, %s2998_s19 }
  0x14   : > { %p2989_p0 = pneg %p2905_p13 }
  0x15   : > { %p3008_p7 = por %p3007_p6, %p3006_p5 }
  0x16   : > { %p3001_p2 = pnand %p2999_p1, %p2989_p0 }
  0x18   : > { %p3002_p3 = pneg %p3001_p2 }
  0x1a   : > { %p3009_p9 = pnand %p3008_p7, %p3002_p3 }
  0x1c   : > { %3012 = shalt.err (!%p3009_p9)
}
  0x1d   : > { %s3096_s20 = smov 512   ;;  %s3097_s21 = smov 32  }
  0x1e   : > { %2907 = dma.hbm_to_vmem [thread:$0]  (!%p2905_p13), %s3938_s5, 8192, %s254_s18, [#allocation4], %s3096_s20, %s3096_s20, %s3097_s21  }
  0x1f   : > { %287 = sbr.rel (%p3198_p10) target bundleno = 887 (0x377), region = 48 }
  0x24   : > { %3064 = dma.done.wait (%p3202_p11), [#allocation4], 8192  }
  0x25   : > { %3066 = vsyncadd (%p3202_p11), [#allocation4], 4294959104  ;;  %p326_p12 = scmp.lt.s32.totalorder %s3085_s27, 1  ;;  %v3098_v0 = vmov 0.0   ;;  %vm3099_vm0 = vmmov 0   ;;  %vm473_vm1 = vcmask 1043456  }
  0x26   : > { %2783 = vmatprep.subr.bf16.mxu0 %v3098_v0  ;;  %2785 = vmatprep.mubr.msk.bf16.mxu0 %vm3099_vm0, %v3098_v0  ;;  %v362_v1 = vld [vmem:[%s3934_s1] sm:$0xf]  ;;  %vm433_vm2 = vcmask 64512   ;;  %v2983_v5 = vld [vmem:[%s3936_s3 + $0x18] sm:$0xff]   ;;  %v2984_v13 = vld [vmem:[%s3936_s3 + $0x10] sm:$0xff]   ;;  %vm690_vm3 = vcmask 523264  }
  0x27   : > { %s327_s30 = scalar_select %p326_p12, %s3085_s27, 1  ;;  %2837 = vmatprep.subr.bf16.mxu1 %v3098_v0  ;;  %2845 = vmatprep.mubr.msk.bf16.mxu1 %vm3099_vm0, %v3098_v0  ;;  %v475_v2 = vsel %vm473_vm1, %v362_v1, 0  ;;  %v2985_v14 = vld [vmem:[%s3936_s3 + $0x8] sm:$0xff]   ;;  %v2986_v16 = vld [vmem:[%s3936_s3] sm:$0xff]  }
  0x28   : > { %2784 = vmatpush3.bf16.msra.mxu0 %v475_v2  ;;  %2838 = vmatpush3.bf16.msra.mxu1 %v2983_v5  ;;  %v960_v20 = vld [vmem:[#allocation3 + $0x1c0] sm:$0xff]  ;;  %v3300_v22 = vld [vmem:[#allocation3 + $0x1c8] sm:$0xff]  ;;  %s321_s19 = sand.u32 1, %s3077_s25   ;;  %s2751_s21 = sshll.u32 %s3085_s27, 7 }
  0x29   : > { %s2897_s8 = smul.u32 100, %s327_s30  ;;  %2839 = vmatprep.subr.bf16.mxu1 %v3098_v0  ;;  %v964_v21 = vld [vmem:[#allocation3 + $0x1e0] sm:$0xff]  ;;  %v3302_v25 = vld [vmem:[#allocation3 + $0x1e8] sm:$0xff]  ;;  %s2635_s20 = sshll.u32 %s321_s19, 3 }
  0x2a   : > { %v2738_v23 = vcombine.low %v960_v20, %v964_v21  ;;  %v2739_v24 = vcombine.high %v960_v20, %v964_v21  ;;  %v952_v26 = vld [vmem:[#allocation3 + $0x180] sm:$0xff]  ;;  %v2741_v28 = vcombine.high %v3300_v22, %v3302_v25  ;;  %v953_v61 = vld [vmem:[#allocation3 + $0x188] sm:$0xff]  ;;  %s323_s22 = scalar_lea.vmem [#allocation6], %s2635_s20  ;;  %s2535_s10 = scalar_lea.hbm %s3940_s7, %s2751_s21 }
  0x2b   : > { %s3230_s15 = scalar_lea.vmem %s3933_s0, %s2897_s8  ;;  %v956_v27 = vld [vmem:[#allocation3 + $0x1a0] sm:$0xff]  ;;  %v957_v62 = vld [vmem:[#allocation3 + $0x1a8] sm:$0xff]  ;;  %s2537_s23 = sshll.u32 %s323_s22, 4  ;;  %s2538_s23 = int_to_ptr.vmem [resolvable:$true] %s2537_s23 }
  0x2c   : > { %v2970_v3 = vld [vmem:[%s3230_s15] sm:$0xff]   ;;  %v2971_v4 = vld [vmem:[%s3230_s15 + $0x8] sm:$0xff]   ;;  %v2972_v6 = vld [vmem:[%s3230_s15 + $0x10] sm:$0xff]   ;;  %2840 = vmatpush3.bf16.msra.mxu1 %v2984_v13  ;;  %v2731_v29 = vcombine.high %v952_v26, %v956_v27  ;;  %1330 = vmatprep.subr.bf16.mxu0 %v2739_v24  ;;  %v2730_v32 = vcombine.low %v952_v26, %v956_v27  ;;  %s2521_s12 = scalar_lea.sflag [#allocation5], %s321_s19  ;;  %s3102_s27 = smov [#allocation6]  }
  0x2d   : > { %2786 = vmatmul.mubr.msk.bf16.vlgmr.msra.gmra.mxu0 %vm433_vm2, %v2970_v3  ;;  %v2973_v7 = vld [vmem:[%s3230_s15 + $0x18] sm:$0xff]   ;;  %v2974_v8 = vld [vmem:[%s3230_s15 + $0x20] sm:$0xff]   ;;  %v2975_v9 = vld [vmem:[%s3230_s15 + $0x28] sm:$0xff]   ;;  %2841 = vmatprep.subr.bf16.mxu1 %v3098_v0  ;;  %s3017_s16 = sshll.u32 %s3102_s27, 4  ;;  %s3018_s16 = int_to_ptr.vmem [resolvable:$false] %s3017_s16 }
  0x2e   : > { %2789 = vmatprep.mubr.msk.bf16.mxu0 %vm3099_vm0, %v3098_v0  ;;  %v2976_v10 = vld [vmem:[%s3230_s15 + $0x30] sm:$0xff]   ;;  %v2977_v11 = vld [vmem:[%s3230_s15 + $0x38] sm:$0xff]   ;;  %v2978_v12 = vld [vmem:[%s3230_s15 + $0x40] sm:$0xff]   ;;  %1331 = vmatpush1.bf16.msra.mxu0 %v2738_v23  ;;  %s3019_s17 = scalar_lea.vmem %s3018_s16, 256  ;;  %p3020_p0 = scmp.lt.s32.totalorder %s2538_s23, %s3018_s16 }
  0x2f   : > { %v2979_v15 = vld [vmem:[%s3230_s15 + $0x48] sm:$0xff]   ;;  %v2980_v17 = vld [vmem:[%s3230_s15 + $0x50] sm:$0xff]   ;;  %v2981_v18 = vld [vmem:[%s3230_s15 + $0x58] sm:$0xff]   ;;  %1332 = vmatprep.subr.bf16.mxu0 %v2731_v29 }
  0x30   : > { %2842 = vmatpush3.bf16.msra.mxu1 %v2985_v14  ;;  %v2982_v19 = vld [vmem:[%s3230_s15 + $0x60] ss:$0 sps:$4 sm:$0xff]   ;;  %v933_v26 = vld [vmem:[#allocation3 + $0xe8] sm:$0xff]  ;;  %s3013_s15 = scalar_lea.vmem %s2538_s23, 128 }
  0x31   : > { %2843 = vmatprep.subr.bf16.mxu1 %v3098_v0  ;;  %v944_v30 = vld [vmem:[#allocation3 + $0x140] sm:$0xff]  ;;  %p3014_p10 = scmp.ne.s32.totalorder %s2538_s23, %s3013_s15  ;;  %p3021_p1 = scmp.lt.s32.totalorder %s3019_s17, %s3013_s15 }
  0x32   : > { %v948_v31 = vld [vmem:[#allocation3 + $0x160] sm:$0xff]  ;;  %1333 = vmatpush1.bf16.msra.mxu0 %v2730_v32 }
  0x33   : > { %v2723_v33 = vcombine.high %v944_v30, %v948_v31  ;;  %v936_v34 = vld [vmem:[#allocation3 + $0x100] sm:$0xff]  ;;  %v2722_v36 = vcombine.low %v944_v30, %v948_v31  ;;  %p3015_p11 = pnand %p3014_p10, %p3183_p4  ;;  %p3022_p2 = por %p3021_p1, %p3020_p0 }
  0x34   : > { %2844 = vmatpush3.bf16.msra.mxu1 %v2986_v16  ;;  %v940_v35 = vld [vmem:[#allocation3 + $0x120] sm:$0xff]  ;;  %v937_v16 = vld [vmem:[#allocation3 + $0x108] sm:$0xff] }
  0x35   : > { %2790 = vmatmul.mubr.msk.bf16.gmra.mxu0 %vm433_vm2, %v2971_v4  ;;  %1491 = vmatprep.subr.bf16.mxu1 %v2741_v28  ;;  %v2715_v37 = vcombine.high %v936_v34, %v940_v35  ;;  %v928_v38 = vld [vmem:[#allocation3 + $0xc0] sm:$0xff]  ;;  %v2714_v40 = vcombine.low %v936_v34, %v940_v35  ;;  %v2740_v4 = vcombine.low %v3300_v22, %v3302_v25  ;;  %v929_v25 = vld [vmem:[#allocation3 + $0xc8] sm:$0xff]  ;;  %p3016_p13 = pneg %p3015_p11 }
  0x36   : > { %2793 = vmatprep.mubr.msk.bf16.mxu0 %vm3099_vm0, %v3098_v0  ;;  %1334 = vmatprep.subr.bf16.mxu0 %v2723_v33  ;;  %v932_v39 = vld [vmem:[#allocation3 + $0xe0] sm:$0xff]  ;;  %v2709_v31 = vcombine.high %v929_v25, %v933_v26  ;;  %v921_v33 = vld [vmem:[#allocation3 + $0x88] sm:$0xff] }
  0x37   : > { %1335 = vmatpush1.bf16.msra.mxu0 %v2722_v36  ;;  %v2707_v41 = vcombine.high %v928_v38, %v932_v39  ;;  %v920_v42 = vld [vmem:[#allocation3 + $0x80] sm:$0xff]  ;;  %v2706_v44 = vcombine.low %v928_v38, %v932_v39  ;;  %v925_v34 = vld [vmem:[#allocation3 + $0xa8] sm:$0xff]  ;;  %v2708_v38 = vcombine.low %v929_v25, %v933_v26  ;;  %p3023_p3 = pnand %p3022_p2, %p3016_p13 }
  0x38   : > { %1336 = vmatprep.subr.bf16.mxu0 %v2715_v37  ;;  %v924_v43 = vld [vmem:[#allocation3 + $0xa0] sm:$0xff] }
  0x39   : > { %v2699_v45 = vcombine.high %v920_v42, %v924_v43  ;;  %v912_v46 = vld [vmem:[#allocation3 + $0x40] sm:$0xff]  ;;  %v2698_v48 = vcombine.low %v920_v42, %v924_v43  ;;  %v913_v42 = vld [vmem:[#allocation3 + $0x48] sm:$0xff] }
  0x3a   : > { %v916_v47 = vld [vmem:[#allocation3 + $0x60] sm:$0xff]  ;;  %v917_v43 = vld [vmem:[#allocation3 + $0x68] sm:$0xff] }
  0x3b   : > { %1337 = vmatpush1.bf16.msra.mxu0 %v2714_v40  ;;  %v3309_v49 = vld [vmem:[%s3935_s2] ss:$0 sm:$0xff]  ;;  %v2691_v51 = vcombine.high %v912_v46, %v916_v47  ;;  %v2690_v56 = vcombine.low %v912_v46, %v916_v47  ;;  %v2701_v40 = vcombine.high %v921_v33, %v925_v34  ;;  %v2700_v46 = vcombine.low %v921_v33, %v925_v34 }
  0x3c   : > { %1338 = vmatprep.subr.bf16.mxu0 %v2707_v41  ;;  %v904_v52 = vld [vmem:[#allocation3] sm:$0xff] }
  0x3d   : > { %2794 = vmatmul.mubr.msk.bf16.gmra.mxu0 %vm433_vm2, %v2972_v6  ;;  %v908_v53 = vld [vmem:[#allocation3 + $0x20] sm:$0xff]  ;;  %v2733_v6 = vcombine.high %v953_v61, %v957_v62 }
  0x3e   : > { %2797 = vmatprep.mubr.msk.bf16.mxu0 %vm3099_vm0, %v3098_v0  ;;  %v2683_v58 = vcombine.high %v904_v52, %v908_v53  ;;  %v2682_v2 = vcombine.low %v904_v52, %v908_v53  ;;  %v909_v52 = vld [vmem:[#allocation3 + $0x28] sm:$0xff] }
  0x3f   : > { %1339 = vmatpush1.bf16.msra.mxu0 %v2706_v44 }
  0x40   : > { %1340 = vmatprep.subr.bf16.mxu0 %v2699_v45 }
  0x43   : > { %1341 = vmatpush1.bf16.msra.mxu0 %v2698_v48  ;;  %v2693_v48 = vcombine.high %v913_v42, %v917_v43 }
  0x44   : > { %1342 = vmatprep.subr.bf16.mxu0 %v2691_v51  ;;  %v905_v51 = vld [vmem:[#allocation3 + $0x8] sm:$0xff] }
  0x45   : > { %2798 = vmatmul.mubr.msk.bf16.gmra.mxu0 %vm433_vm2, %v2973_v7 }
  0x46   : > { %2801 = vmatprep.mubr.msk.bf16.mxu0 %vm3099_vm0, %v3098_v0 }
  0x47   : > { %1343 = vmatpush1.bf16.msra.mxu0 %v2690_v56  ;;  %v2692_v56 = vcombine.low %v913_v42, %v917_v43 }
  0x48   : > { %1344 = vmatprep.subr.bf16.mxu0 %v2683_v58  ;;  %v2685_v58 = vcombine.high %v905_v51, %v909_v52 }
  0x4b   : > { %1345 = vmatpush1.bf16.msra.mxu0 %v2682_v2 }
  0x4d   : > { %2802 = vmatmul.mubr.msk.bf16.gmra.mxu0 %vm433_vm2, %v2974_v8  ;;  %v945_v8 = vld [vmem:[#allocation3 + $0x148] sm:$0xff] }
  0x4e   : > { %2805 = vmatprep.mubr.msk.bf16.mxu0 %vm3099_vm0, %v3098_v0 }
  0x55   : > { %2806 = vmatmul.mubr.msk.bf16.gmra.mxu0 %vm433_vm2, %v2975_v9  ;;  %v949_v9 = vld [vmem:[#allocation3 + $0x168] sm:$0xff] }
  0x56   : > { %2809 = vmatprep.mubr.msk.bf16.mxu0 %vm3099_vm0, %v3098_v0  ;;  %v2725_v14 = vcombine.high %v945_v8, %v949_v9  ;;  %v2724_v21 = vcombine.low %v945_v8, %v949_v9 }
  0x5d   : > { %2810 = vmatmul.mubr.msk.bf16.gmra.mxu0 %vm433_vm2, %v2976_v10 }
  0x5e   : > { %2813 = vmatprep.mubr.msk.bf16.mxu0 %vm3099_vm0, %v3098_v0 }
  0x65   : > { %2814 = vmatmul.mubr.msk.bf16.gmra.mxu0 %vm433_vm2, %v2977_v11 }
  0x66   : > { %2817 = vmatprep.mubr.msk.bf16.mxu0 %vm3099_vm0, %v3098_v0 }
  0x6d   : > { %2818 = vmatmul.mubr.msk.bf16.gmra.mxu0 %vm433_vm2, %v2978_v12  ;;  %v2732_v12 = vcombine.low %v953_v61, %v957_v62  ;;  %v2684_v62 = vcombine.low %v905_v51, %v909_v52 }
  0x6e   : > { %2821 = vmatprep.mubr.msk.bf16.mxu0 %vm3099_vm0, %v3098_v0 }
  0x75   : > { %2822 = vmatmul.mubr.msk.bf16.gmra.mxu0 %vm433_vm2, %v2979_v15 }
  0x76   : > { %2825 = vmatprep.mubr.msk.bf16.mxu0 %vm3099_vm0, %v3098_v0 }
  0x7d   : > { %2826 = vmatmul.mubr.msk.bf16.gmra.mxu0 %vm433_vm2, %v2980_v17  ;;  %v941_v17 = vld [vmem:[#allocation3 + $0x128] sm:$0xff] }
  0x7e   : > { %2829 = vmatprep.mubr.msk.bf16.mxu0 %vm3099_vm0, %v3098_v0  ;;  %v2717_v23 = vcombine.high %v937_v16, %v941_v17  ;;  %v2716_v29 = vcombine.low %v937_v16, %v941_v17 }
  0x85   : > { %2830 = vmatmul.mubr.msk.bf16.gmra.mxu0 %vm433_vm2, %v2981_v18 }
  0x86   : > { %2833 = vmatprep.mubr.msk.bf16.mxu0 %vm3099_vm0, %v3098_v0 }
  0x8d   : > { %2834 = vmatmul.mubr.msk.bf16.gmra.mxu0 %vm433_vm2, %v2982_v19 }
  0xed   : > { %v511_v50 = vpop.f32.mrf.mxu0 }
  0xee   : > { %v512_v55 = vadd.f32 %v3309_v49, %v511_v50 }
  0xef   : > { %v2787_v54 = vpop.f32.mrf.mxu0 }
  0xf0   : > { %v613_v63 = vmax.f32 %v512_v55, 0.0 }
  0xf1   : > { %v514_v57 = vpop.f32.mrf.mxu0 }
  0xf2   : > { %v515_v59 = vadd.f32 %v3309_v49, %v514_v57 }
  0xf3   : > { %v2788_v60 = vpop.f32.mrf.mxu0 }
  0xf4   : > { %v614_v1 = vmax.f32 %v515_v59, 0.0 }
  0xf5   : > { %v519_v3 = vpop.f32.mrf.mxu0 }
  0xf6   : > { %v638_v5 = vpack.c.bf16 %v614_v1, %v613_v63  ;;  %v520_v10 = vadd.f32 %v3309_v49, %v519_v3 }
  0xf7   : > { %v2791_v7 = vpop.f32.mrf.mxu0 }
  0xf8   : > { %2846 = vmatmul.mubr.msk.bf16.vlgmr.msra.gmra.mxu1 %vm690_vm3, %v638_v5  ;;  %v615_v18 = vmax.f32 %v520_v10, 0.0 }
  0xf9   : > { %v522_v11 = vpop.f32.mrf.mxu0  ;;  %2849 = vmatprep.mubr.msk.bf16.mxu1 %vm3099_vm0, %v3098_v0  ;;  %1492 = vmatpush1.bf16.msra.mxu1 %v2740_v4 }
  0xfa   : > { %v523_v13 = vadd.f32 %v3309_v49, %v522_v11  ;;  %1493 = vmatprep.subr.bf16.mxu1 %v2733_v6 }
  0xfb   : > { %v2792_v15 = vpop.f32.mrf.mxu0 }
  0xfc   : > { %v616_v19 = vmax.f32 %v523_v13, 0.0 }
  0xfd   : > { %v527_v20 = vpop.f32.mrf.mxu0  ;;  %1494 = vmatpush1.bf16.msra.mxu1 %v2732_v12 }
  0xfe   : > { %v639_v22 = vpack.c.bf16 %v616_v19, %v615_v18  ;;  %1495 = vmatprep.subr.bf16.mxu1 %v2725_v14  ;;  %v528_v27 = vadd.f32 %v3309_v49, %v527_v20 }
  0xff   : > { %v2795_v24 = vpop.f32.mrf.mxu0 }
 0x100   : > { %2850 = vmatmul.mubr.msk.bf16.gmra.mxu1 %vm690_vm3, %v639_v22  ;;  %v617_v35 = vmax.f32 %v528_v27, 0.0 }
 0x101   : > { %v530_v28 = vpop.f32.mrf.mxu0  ;;  %2853 = vmatprep.mubr.msk.bf16.mxu1 %vm3099_vm0, %v3098_v0  ;;  %1496 = vmatpush1.bf16.msra.mxu1 %v2724_v21 }
 0x102   : > { %v531_v30 = vadd.f32 %v3309_v49, %v530_v28  ;;  %1497 = vmatprep.subr.bf16.mxu1 %v2717_v23 }
 0x103   : > { %v2796_v32 = vpop.f32.mrf.mxu0 }
 0x104   : > { %v618_v36 = vmax.f32 %v531_v30, 0.0 }
 0x105   : > { %v535_v37 = vpop.f32.mrf.mxu0  ;;  %1498 = vmatpush1.bf16.msra.mxu1 %v2716_v29 }
 0x106   : > { %v640_v39 = vpack.c.bf16 %v618_v36, %v617_v35  ;;  %1499 = vmatprep.subr.bf16.mxu1 %v2709_v31  ;;  %v536_v44 = vadd.f32 %v3309_v49, %v535_v37 }
 0x107   : > { %v2799_v41 = vpop.f32.mrf.mxu0 }
 0x108   : > { %2854 = vmatmul.mubr.msk.bf16.gmra.mxu1 %vm690_vm3, %v640_v39  ;;  %v619_v53 = vmax.f32 %v536_v44, 0.0 }
 0x109   : > { %v538_v45 = vpop.f32.mrf.mxu0  ;;  %2857 = vmatprep.mubr.msk.bf16.mxu1 %vm3099_vm0, %v3098_v0  ;;  %1500 = vmatpush1.bf16.msra.mxu1 %v2708_v38 }
 0x10a   : > { %v539_v47 = vadd.f32 %v3309_v49, %v538_v45  ;;  %1501 = vmatprep.subr.bf16.mxu1 %v2701_v40 }
 0x10b   : > { %v2800_v50 = vpop.f32.mrf.mxu0 }
 0x10c   : > { %v620_v54 = vmax.f32 %v539_v47, 0.0 }
 0x10d   : > { %v543_v55 = vpop.f32.mrf.mxu0  ;;  %1502 = vmatpush1.bf16.msra.mxu1 %v2700_v46 }
 0x10e   : > { %v641_v57 = vpack.c.bf16 %v620_v54, %v619_v53  ;;  %1503 = vmatprep.subr.bf16.mxu1 %v2693_v48  ;;  %v544_v60 = vadd.f32 %v3309_v49, %v543_v55 }
 0x10f   : > { %v2803_v59 = vpop.f32.mrf.mxu0 }
 0x110   : > { %2858 = vmatmul.mubr.msk.bf16.gmra.mxu1 %vm690_vm3, %v641_v57  ;;  %v621_v2 = vmax.f32 %v544_v60, 0.0  ;;  %v966_v59 = vld [vmem:[#allocation3 + $0x1f0] sm:$0xff]  ;;  %v963_v60 = vld [vmem:[#allocation3 + $0x1d8] sm:$0xff] }
 0x111   : > { %v546_v61 = vpop.f32.mrf.mxu0  ;;  %2861 = vmatprep.mubr.msk.bf16.mxu1 %vm3099_vm0, %v3098_v0  ;;  %1504 = vmatpush1.bf16.msra.mxu1 %v2692_v56  ;;  %v3100_v56 = vmov 0  }
 0x112   : > { %v547_v63 = vadd.f32 %v3309_v49, %v546_v61  ;;  %1505 = vmatprep.subr.bf16.mxu1 %v2685_v58  ;;  %1362 = vmatprep.mubr.bf16.mxu0 %v3100_v56  ;;  %v962_v58 = vld [vmem:[#allocation3 + $0x1d0] sm:$0xff] }
 0x113   : > { %v2804_v1 = vpop.f32.mrf.mxu0 }
 0x114   : > { %v622_v3 = vmax.f32 %v547_v63, 0.0  ;;  %v2742_v63 = vcombine.low %v962_v58, %v966_v59  ;;  %v2743_v1 = vcombine.high %v962_v58, %v966_v59 }
 0x115   : > { %v551_v4 = vpop.f32.mrf.mxu0  ;;  %1506 = vmatpush1.bf16.msra.mxu1 %v2684_v62 }
 0x116   : > { %v642_v5 = vpack.c.bf16 %v622_v3, %v621_v2  ;;  %v552_v7 = vadd.f32 %v3309_v49, %v551_v4  ;;  %v967_v2 = vld [vmem:[#allocation3 + $0x1f8] sm:$0xff]  ;;  %1652 = vmatprep.subr.bf16.mxu0 %v2743_v1 }
 0x117   : > { %v2807_v6 = vpop.f32.mrf.mxu0  ;;  %v2744_v4 = vcombine.low %v963_v60, %v967_v2 }
 0x118   : > { %2862 = vmatmul.mubr.msk.bf16.gmra.mxu1 %vm690_vm3, %v642_v5  ;;  %v623_v11 = vmax.f32 %v552_v7, 0.0  ;;  %v2745_v5 = vcombine.high %v963_v60, %v967_v2  ;;  %v930_v2 = vld [vmem:[#allocation3 + $0xd0] sm:$0xff] }
 0x119   : > { %v554_v8 = vpop.f32.mrf.mxu0  ;;  %2865 = vmatprep.mubr.msk.bf16.mxu1 %vm3099_vm0, %v3098_v0 }
 0x11a   : > { %v555_v9 = vadd.f32 %v3309_v49, %v554_v8  ;;  %1813 = vmatprep.subr.bf16.mxu1 %v2745_v5  ;;  %v931_v5 = vld [vmem:[#allocation3 + $0xd8] sm:$0xff] }
 0x11b   : > { %v2808_v10 = vpop.f32.mrf.mxu0 }
 0x11c   : > { %v624_v12 = vmax.f32 %v555_v9, 0.0 }
 0x11d   : > { %v559_v13 = vpop.f32.mrf.mxu0 }
 0x11e   : > { %v643_v14 = vpack.c.bf16 %v624_v12, %v623_v11  ;;  %v560_v16 = vadd.f32 %v3309_v49, %v559_v13 }
 0x11f   : > { %v2811_v15 = vpop.f32.mrf.mxu0 }
 0x120   : > { %2866 = vmatmul.mubr.msk.bf16.gmra.mxu1 %vm690_vm3, %v643_v14  ;;  %v625_v20 = vmax.f32 %v560_v16, 0.0 }
 0x121   : > { %v562_v17 = vpop.f32.mrf.mxu0  ;;  %2869 = vmatprep.mubr.msk.bf16.mxu1 %vm3099_vm0, %v3098_v0 }
 0x122   : > { %v563_v18 = vadd.f32 %v3309_v49, %v562_v17 }
 0x123   : > { %v2812_v19 = vpop.f32.mrf.mxu0 }
 0x124   : > { %v626_v21 = vmax.f32 %v563_v18, 0.0 }
 0x125   : > { %v567_v22 = vpop.f32.mrf.mxu0 }
 0x126   : > { %v644_v23 = vpack.c.bf16 %v626_v21, %v625_v20  ;;  %v568_v25 = vadd.f32 %v3309_v49, %v567_v22  ;;  %v3380_v22 = vld [vmem:[%s3937_s4] ss:$0 sm:$0xff] }
 0x127   : > { %v2815_v24 = vpop.f32.mrf.mxu0 }
 0x128   : > { %2870 = vmatmul.mubr.msk.bf16.gmra.mxu1 %vm690_vm3, %v644_v23  ;;  %v627_v29 = vmax.f32 %v568_v25, 0.0 }
 0x129   : > { %v570_v26 = vpop.f32.mrf.mxu0  ;;  %2873 = vmatprep.mubr.msk.bf16.mxu1 %vm3099_vm0, %v3098_v0 }
 0x12a   : > { %v571_v27 = vadd.f32 %v3309_v49, %v570_v26 }
 0x12b   : > { %v2816_v28 = vpop.f32.mrf.mxu0 }
 0x12c   : > { %v628_v30 = vmax.f32 %v571_v27, 0.0 }
 0x12d   : > { %v575_v31 = vpop.f32.mrf.mxu0 }
 0x12e   : > { %v645_v32 = vpack.c.bf16 %v628_v30, %v627_v29  ;;  %v576_v34 = vadd.f32 %v3309_v49, %v575_v31  ;;  %v958_v30 = vld [vmem:[#allocation3 + $0x1b0] sm:$0xff]  ;;  %v955_v31 = vld [vmem:[#allocation3 + $0x198] sm:$0xff] }
 0x12f   : > { %v2819_v33 = vpop.f32.mrf.mxu0 }
 0x130   : > { %2874 = vmatmul.mubr.msk.bf16.gmra.mxu1 %vm690_vm3, %v645_v32  ;;  %v629_v38 = vmax.f32 %v576_v34, 0.0  ;;  %v959_v32 = vld [vmem:[#allocation3 + $0x1b8] sm:$0xff] }
 0x131   : > { %v578_v35 = vpop.f32.mrf.mxu0  ;;  %2877 = vmatprep.mubr.msk.bf16.mxu1 %vm3099_vm0, %v3098_v0 }
 0x132   : > { %v579_v36 = vadd.f32 %v3309_v49, %v578_v35  ;;  %v946_v35 = vld [vmem:[#allocation3 + $0x150] sm:$0xff] }
 0x133   : > { %v2820_v37 = vpop.f32.mrf.mxu0 }
 0x134   : > { %v630_v39 = vmax.f32 %v579_v36, 0.0 }
 0x135   : > { %v583_v40 = vpop.f32.mrf.mxu0 }
 0x136   : > { %v646_v41 = vpack.c.bf16 %v630_v39, %v629_v38  ;;  %v584_v43 = vadd.f32 %v3309_v49, %v583_v40  ;;  %v2737_v38 = vcombine.high %v955_v31, %v959_v32  ;;  %v950_v39 = vld [vmem:[#allocation3 + $0x170] sm:$0xff]  ;;  %v947_v40 = vld [vmem:[#allocation3 + $0x158] sm:$0xff] }
 0x137   : > { %v2823_v42 = vpop.f32.mrf.mxu0  ;;  %v2726_v60 = vcombine.low %v946_v35, %v950_v39 }
 0x138   : > { %2878 = vmatmul.mubr.msk.bf16.gmra.mxu1 %vm690_vm3, %v646_v41  ;;  %v631_v47 = vmax.f32 %v584_v43, 0.0  ;;  %v951_v41 = vld [vmem:[#allocation3 + $0x178] sm:$0xff] }
 0x139   : > { %v586_v44 = vpop.f32.mrf.mxu0  ;;  %2881 = vmatprep.mubr.msk.bf16.mxu1 %vm3099_vm0, %v3098_v0 }
 0x13a   : > { %v587_v45 = vadd.f32 %v3309_v49, %v586_v44 }
 0x13b   : > { %v2824_v46 = vpop.f32.mrf.mxu0 }
 0x13c   : > { %v632_v48 = vmax.f32 %v587_v45, 0.0  ;;  %v2736_v45 = vcombine.low %v955_v31, %v959_v32 }
 0x13d   : > { %v591_v50 = vpop.f32.mrf.mxu0 }
 0x13e   : > { %v647_v51 = vpack.c.bf16 %v632_v48, %v631_v47  ;;  %v592_v53 = vadd.f32 %v3309_v49, %v591_v50  ;;  %v2727_v47 = vcombine.high %v946_v35, %v950_v39  ;;  %v2729_v48 = vcombine.high %v947_v40, %v951_v41  ;;  %v906_v39 = vld [vmem:[#allocation3 + $0x10] sm:$0xff] }
 0x13f   : > { %v2827_v52 = vpop.f32.mrf.mxu0 }
 0x140   : > { %2882 = vmatmul.mubr.msk.bf16.gmra.mxu1 %vm690_vm3, %v647_v51  ;;  %v633_v61 = vmax.f32 %v592_v53, 0.0  ;;  %v938_v51 = vld [vmem:[#allocation3 + $0x110] sm:$0xff] }
 0x141   : > { %v594_v54 = vpop.f32.mrf.mxu0  ;;  %2885 = vmatprep.mubr.msk.bf16.mxu1 %vm3099_vm0, %v3098_v0 }
 0x142   : > { %v595_v55 = vadd.f32 %v3309_v49, %v594_v54  ;;  %v942_v54 = vld [vmem:[#allocation3 + $0x130] sm:$0xff] }
 0x143   : > { %v2828_v57 = vpop.f32.mrf.mxu0 }
 0x144   : > { %v634_v62 = vmax.f32 %v595_v55, 0.0  ;;  %v939_v55 = vld [vmem:[#allocation3 + $0x118] sm:$0xff] }
 0x145   : > { %v599_v3 = vpop.f32.mrf.mxu0  ;;  %v943_v57 = vld [vmem:[#allocation3 + $0x138] sm:$0xff] }
 0x146   : > { %v648_v6 = vpack.c.bf16 %v634_v62, %v633_v61  ;;  %v600_v8 = vadd.f32 %v3309_v49, %v599_v3  ;;  %v2728_v61 = vcombine.low %v947_v40, %v951_v41  ;;  %v2721_v1 = vcombine.high %v939_v55, %v943_v57 }
 0x147   : > { %v2831_v7 = vpop.f32.mrf.mxu0 }
 0x148   : > { %2886 = vmatmul.mubr.msk.bf16.gmra.mxu1 %vm690_vm3, %v648_v6  ;;  %v635_v12 = vmax.f32 %v600_v8, 0.0  ;;  %v935_v6 = vld [vmem:[#allocation3 + $0xf8] sm:$0xff] }
 0x149   : > { %v602_v9 = vpop.f32.mrf.mxu0  ;;  %2889 = vmatprep.mubr.msk.bf16.mxu1 %vm3099_vm0, %v3098_v0 }
 0x14a   : > { %v603_v10 = vadd.f32 %v3309_v49, %v602_v9  ;;  %v2718_v9 = vcombine.low %v938_v51, %v942_v54 }
 0x14b   : > { %v2832_v11 = vpop.f32.mrf.mxu0 }
 0x14c   : > { %v636_v13 = vmax.f32 %v603_v10, 0.0  ;;  %v2720_v10 = vcombine.low %v939_v55, %v943_v57 }
 0x14d   : > { %v607_v14 = vpop.f32.mrf.mxu0 }
 0x14e   : > { %v649_v15 = vpack.c.bf16 %v636_v13, %v635_v12  ;;  %v608_v16 = vadd.f32 %v3309_v49, %v607_v14  ;;  %v2713_v13 = vcombine.high %v931_v5, %v935_v6  ;;  %v922_v14 = vld [vmem:[#allocation3 + $0x90] sm:$0xff] }
 0x14f   : > { %v2835_v17 = vpop.f32.mrf.mxu0 }
 0x150   : > { %v637_v18 = vmax.f32 %v608_v16, 0.0  ;;  %2890 = vmatmul.mubr.msk.bf16.gmra.mxu1 %vm690_vm3, %v649_v15  ;;  %v926_v17 = vld [vmem:[#allocation3 + $0xb0] sm:$0xff] }
 0x151   : > { %v610_v19 = vpop.f32.mrf.mxu0  ;;  %2893 = vmatprep.mubr.msk.bf16.mxu1 %vm3099_vm0, %v3098_v0  ;;  %v954_v0 = vld [vmem:[#allocation3 + $0x190] sm:$0xff] }
 0x152   : > { %v650_v21 = vpack.c.bf16 %v637_v18, %v637_v18  ;;  %v2735_v37 = vcombine.high %v954_v0, %v958_v30  ;;  %v2734_v44 = vcombine.low %v954_v0, %v958_v30  ;;  %v923_v18 = vld [vmem:[#allocation3 + $0x98] sm:$0xff] }
 0x153   : > { %v2836_v20 = vpop.f32.mrf.mxu0  ;;  %v927_v19 = vld [vmem:[#allocation3 + $0xb8] sm:$0xff] }
 0x154   : > { %v919_v30 = vld [vmem:[#allocation3 + $0x78] sm:$0xff]  ;;  %v2704_v35 = vcombine.low %v923_v18, %v927_v19 }
 0x158   : > { %2894 = vmatmul.mubr.msk.bf16.gmra.mxu1 %vm690_vm3, %v650_v21 }
 0x159   : > { %1523 = vmatprep.mubr.bf16.mxu1 %v3100_v56 }
 0x1b8   : > { %v764_v49 = vpop.f32.mrf.mxu1 }
 0x1b9   : > { %v765_v24 = vadd.f32 %v3380_v22, %v764_v49 }
 0x1ba   : > { %v2847_v23 = vpop.f32.mrf.mxu1 }
 0x1bb   : > { %v866_v28 = vmax.f32 %v765_v24, 0.0  ;;  %v2712_v23 = vcombine.low %v931_v5, %v935_v6 }
 0x1bc   : > { %v767_v25 = vpop.f32.mrf.mxu1 }
 0x1bd   : > { %v768_v26 = vadd.f32 %v3380_v22, %v767_v25  ;;  %v2703_v25 = vcombine.high %v922_v14, %v926_v17 }
 0x1be   : > { %v2848_v27 = vpop.f32.mrf.mxu1 }
 0x1bf   : > { %v867_v29 = vmax.f32 %v768_v26, 0.0  ;;  %v2705_v26 = vcombine.high %v923_v18, %v927_v19  ;;  %v914_v27 = vld [vmem:[#allocation3 + $0x50] sm:$0xff] }
 0x1c0   : > { %v772_v33 = vpop.f32.mrf.mxu1 }
 0x1c1   : > { %v3384_v34 = vpack.c.bf16 %v867_v29, %v866_v28  ;;  %v773_v42 = vadd.f32 %v3380_v22, %v772_v33  ;;  %v918_v28 = vld [vmem:[#allocation3 + $0x70] sm:$0xff]  ;;  %v915_v29 = vld [vmem:[#allocation3 + $0x58] sm:$0xff]  ;;  %v2702_v33 = vcombine.low %v922_v14, %v926_v17 }
 0x1c2   : > { %v2851_v36 = vpop.f32.mrf.mxu1 }
 0x1c3   : > { %1363 = vmatmul.mubr.bf16.vlgmr.msra.gmra.mxu0 %v3384_v34  ;;  %1524 = vmatmul.mubr.bf16.vlgmr.msra.gmra.mxu1 %v3384_v34  ;;  %v868_v52 = vmax.f32 %v773_v42, 0.0  ;;  %v910_v42 = vld [vmem:[#allocation3 + $0x30] sm:$0xff] }
 0x1c4   : > { %1653 = vmatpush1.bf16.msra.mxu0 %v2742_v63  ;;  %1814 = vmatpush1.bf16.msra.mxu1 %v2744_v4  ;;  %v775_v43 = vpop.f32.mrf.mxu1  ;;  %v2719_v63 = vcombine.high %v938_v51, %v942_v54  ;;  %v934_v4 = vld [vmem:[#allocation3 + $0xf0] sm:$0xff]  ;;  %v2687_v51 = vcombine.high %v906_v39, %v910_v42  ;;  %v2686_v57 = vcombine.low %v906_v39, %v910_v42 }
 0x1c5   : > { %v776_v46 = vadd.f32 %v3380_v22, %v775_v43  ;;  %1372 = vmatprep.mubr.bf16.mxu0 %v3100_v56  ;;  %1533 = vmatprep.mubr.bf16.mxu1 %v3100_v56  ;;  %v2711_v12 = vcombine.high %v930_v2, %v934_v4  ;;  %v2710_v49 = vcombine.low %v930_v2, %v934_v4  ;;  %v907_v43 = vld [vmem:[#allocation3 + $0x18] sm:$0xff] }
 0x1c6   : > { %v2852_v50 = vpop.f32.mrf.mxu1  ;;  %1654 = vmatprep.subr.bf16.mxu0 %v2735_v37  ;;  %1815 = vmatprep.subr.bf16.mxu1 %v2737_v38  ;;  %v2695_v37 = vcombine.high %v914_v27, %v918_v28  ;;  %v2697_v38 = vcombine.high %v915_v29, %v919_v30 }
 0x1c7   : > { %v869_v53 = vmax.f32 %v776_v46, 0.0 }
 0x1c8   : > { %v780_v58 = vpop.f32.mrf.mxu1  ;;  %1655 = vmatpush1.bf16.msra.mxu0 %v2734_v44  ;;  %1816 = vmatpush1.bf16.msra.mxu1 %v2736_v45  ;;  %v911_v44 = vld [vmem:[#allocation3 + $0x38] sm:$0xff] }
 0x1c9   : > { %v3392_v59 = vpack.c.bf16 %v869_v53, %v868_v52  ;;  %1656 = vmatprep.subr.bf16.mxu0 %v2727_v47  ;;  %1817 = vmatprep.subr.bf16.mxu1 %v2729_v48  ;;  %v781_v3 = vadd.f32 %v3380_v22, %v780_v58  ;;  %v2694_v47 = vcombine.low %v914_v27, %v918_v28 }
 0x1ca   : > { %v2855_v62 = vpop.f32.mrf.mxu1  ;;  %v2696_v48 = vcombine.low %v915_v29, %v919_v30  ;;  %v2689_v52 = vcombine.high %v907_v43, %v911_v44  ;;  %v2688_v58 = vcombine.low %v907_v43, %v911_v44 }
 0x1cb   : > { %1373 = vmatmul.mubr.bf16.gmra.mxu0 %v3392_v59  ;;  %1534 = vmatmul.mubr.bf16.gmra.mxu1 %v3392_v59  ;;  %v870_v15 = vmax.f32 %v781_v3, 0.0 }
 0x1cc   : > { %v783_v7 = vpop.f32.mrf.mxu1  ;;  %1382 = vmatprep.mubr.bf16.mxu0 %v3100_v56  ;;  %1543 = vmatprep.mubr.bf16.mxu1 %v3100_v56 }
 0x1cd   : > { %v784_v8 = vadd.f32 %v3380_v22, %v783_v7  ;;  %1657 = vmatpush1.bf16.msra.mxu0 %v2726_v60  ;;  %1818 = vmatpush1.bf16.msra.mxu1 %v2728_v61 }
 0x1ce   : > { %v2856_v11 = vpop.f32.mrf.mxu1  ;;  %1658 = vmatprep.subr.bf16.mxu0 %v2719_v63  ;;  %1819 = vmatprep.subr.bf16.mxu1 %v2721_v1 }
 0x1cf   : > { %v871_v16 = vmax.f32 %v784_v8, 0.0 }
 0x1d0   : > { %v788_v20 = vpop.f32.mrf.mxu1 }
 0x1d1   : > { %v3400_v21 = vpack.c.bf16 %v871_v16, %v870_v15  ;;  %1659 = vmatpush1.bf16.msra.mxu0 %v2718_v9  ;;  %1820 = vmatpush1.bf16.msra.mxu1 %v2720_v10  ;;  %v789_v0 = vadd.f32 %v3380_v22, %v788_v20 }
 0x1d2   : > { %v2859_v24 = vpop.f32.mrf.mxu1  ;;  %1660 = vmatprep.subr.bf16.mxu0 %v2711_v12  ;;  %1821 = vmatprep.subr.bf16.mxu1 %v2713_v13 }
 0x1d3   : > { %1383 = vmatmul.mubr.bf16.gmra.mxu0 %v3400_v21  ;;  %1544 = vmatmul.mubr.bf16.gmra.mxu1 %v3400_v21  ;;  %v872_v40 = vmax.f32 %v789_v0, 0.0 }
 0x1d4   : > { %v791_v31 = vpop.f32.mrf.mxu1  ;;  %1392 = vmatprep.mubr.bf16.mxu0 %v3100_v56  ;;  %1553 = vmatprep.mubr.bf16.mxu1 %v3100_v56 }
 0x1d5   : > { %v792_v32 = vadd.f32 %v3380_v22, %v791_v31  ;;  %1661 = vmatpush1.bf16.msra.mxu0 %v2710_v49  ;;  %1822 = vmatpush1.bf16.msra.mxu1 %v2712_v23 }
 0x1d6   : > { %v2860_v36 = vpop.f32.mrf.mxu1  ;;  %1662 = vmatprep.subr.bf16.mxu0 %v2703_v25  ;;  %1823 = vmatprep.subr.bf16.mxu1 %v2705_v26 }
 0x1d7   : > { %v873_v41 = vmax.f32 %v792_v32, 0.0 }
 0x1d8   : > { %v796_v45 = vpop.f32.mrf.mxu1 }
 0x1d9   : > { %v3408_v46 = vpack.c.bf16 %v873_v41, %v872_v40  ;;  %1663 = vmatpush1.bf16.msra.mxu0 %v2702_v33  ;;  %1824 = vmatpush1.bf16.msra.mxu1 %v2704_v35  ;;  %v797_v53 = vadd.f32 %v3380_v22, %v796_v45 }
 0x1da   : > { %v2863_v50 = vpop.f32.mrf.mxu1  ;;  %1664 = vmatprep.subr.bf16.mxu0 %v2695_v37  ;;  %1825 = vmatprep.subr.bf16.mxu1 %v2697_v38 }
 0x1db   : > { %1393 = vmatmul.mubr.bf16.gmra.mxu0 %v3408_v46  ;;  %1554 = vmatmul.mubr.bf16.gmra.mxu1 %v3408_v46  ;;  %v874_v61 = vmax.f32 %v797_v53, 0.0 }
 0x1dc   : > { %v799_v54 = vpop.f32.mrf.mxu1  ;;  %1402 = vmatprep.mubr.bf16.mxu0 %v3100_v56  ;;  %1563 = vmatprep.mubr.bf16.mxu1 %v3100_v56 }
 0x1dd   : > { %v800_v55 = vadd.f32 %v3380_v22, %v799_v54  ;;  %1665 = vmatpush1.bf16.msra.mxu0 %v2694_v47  ;;  %1826 = vmatpush1.bf16.msra.mxu1 %v2696_v48 }
 0x1de   : > { %v2864_v60 = vpop.f32.mrf.mxu1  ;;  %1666 = vmatprep.subr.bf16.mxu0 %v2687_v51  ;;  %1827 = vmatprep.subr.bf16.mxu1 %v2689_v52 }
 0x1df   : > { %v875_v62 = vmax.f32 %v800_v55, 0.0 }
 0x1e0   : > { %v804_v63 = vpop.f32.mrf.mxu1 }
 0x1e1   : > { %v3416_v1 = vpack.c.bf16 %v875_v62, %v874_v61  ;;  %1667 = vmatpush1.bf16.msra.mxu0 %v2686_v57  ;;  %1828 = vmatpush1.bf16.msra.mxu1 %v2688_v58  ;;  %v805_v3 = vadd.f32 %v3380_v22, %v804_v63 }
 0x1e2   : > { %v2867_v2 = vpop.f32.mrf.mxu1 }
 0x1e3   : > { %1403 = vmatmul.mubr.bf16.gmra.mxu0 %v3416_v1  ;;  %1564 = vmatmul.mubr.bf16.gmra.mxu1 %v3416_v1  ;;  %v876_v7 = vmax.f32 %v805_v3, 0.0 }
 0x1e4   : > { %v807_v4 = vpop.f32.mrf.mxu1  ;;  %1412 = vmatprep.mubr.bf16.mxu0 %v3100_v56  ;;  %1573 = vmatprep.mubr.bf16.mxu1 %v3100_v56 }
 0x1e5   : > { %v808_v5 = vadd.f32 %v3380_v22, %v807_v4 }
 0x1e6   : > { %v2868_v6 = vpop.f32.mrf.mxu1 }
 0x1e7   : > { %v877_v8 = vmax.f32 %v808_v5, 0.0 }
 0x1e8   : > { %v812_v9 = vpop.f32.mrf.mxu1 }
 0x1e9   : > { %v3424_v10 = vpack.c.bf16 %v877_v8, %v876_v7  ;;  %v813_v12 = vadd.f32 %v3380_v22, %v812_v9 }
 0x1ea   : > { %v2871_v11 = vpop.f32.mrf.mxu1 }
 0x1eb   : > { %1413 = vmatmul.mubr.bf16.gmra.mxu0 %v3424_v10  ;;  %1574 = vmatmul.mubr.bf16.gmra.mxu1 %v3424_v10  ;;  %v878_v16 = vmax.f32 %v813_v12, 0.0 }
 0x1ec   : > { %v815_v13 = vpop.f32.mrf.mxu1  ;;  %1422 = vmatprep.mubr.bf16.mxu0 %v3100_v56  ;;  %1583 = vmatprep.mubr.bf16.mxu1 %v3100_v56 }
 0x1ed   : > { %v816_v14 = vadd.f32 %v3380_v22, %v815_v13 }
 0x1ee   : > { %v2872_v15 = vpop.f32.mrf.mxu1 }
 0x1ef   : > { %v879_v17 = vmax.f32 %v816_v14, 0.0 }
 0x1f0   : > { %v820_v18 = vpop.f32.mrf.mxu1 }
 0x1f1   : > { %v3432_v19 = vpack.c.bf16 %v879_v17, %v878_v16  ;;  %v821_v49 = vadd.f32 %v3380_v22, %v820_v18 }
 0x1f2   : > { %v2875_v20 = vpop.f32.mrf.mxu1 }
 0x1f3   : > { %1423 = vmatmul.mubr.bf16.gmra.mxu0 %v3432_v19  ;;  %1584 = vmatmul.mubr.bf16.gmra.mxu1 %v3432_v19  ;;  %v880_v26 = vmax.f32 %v821_v49, 0.0 }
 0x1f4   : > { %v823_v23 = vpop.f32.mrf.mxu1  ;;  %1432 = vmatprep.mubr.bf16.mxu0 %v3100_v56  ;;  %1593 = vmatprep.mubr.bf16.mxu1 %v3100_v56 }
 0x1f5   : > { %v824_v24 = vadd.f32 %v3380_v22, %v823_v23 }
 0x1f6   : > { %v2876_v25 = vpop.f32.mrf.mxu1 }
 0x1f7   : > { %v881_v27 = vmax.f32 %v824_v24, 0.0 }
 0x1f8   : > { %v828_v0 = vpop.f32.mrf.mxu1 }
 0x1f9   : > { %v3440_v28 = vpack.c.bf16 %v881_v27, %v880_v26  ;;  %v829_v30 = vadd.f32 %v3380_v22, %v828_v0 }
 0x1fa   : > { %v2879_v29 = vpop.f32.mrf.mxu1 }
 0x1fb   : > { %1433 = vmatmul.mubr.bf16.gmra.mxu0 %v3440_v28  ;;  %1594 = vmatmul.mubr.bf16.gmra.mxu1 %v3440_v28  ;;  %v882_v35 = vmax.f32 %v829_v30, 0.0 }
 0x1fc   : > { %v831_v31 = vpop.f32.mrf.mxu1  ;;  %1442 = vmatprep.mubr.bf16.mxu0 %v3100_v56  ;;  %1603 = vmatprep.mubr.bf16.mxu1 %v3100_v56 }
 0x1fd   : > { %v832_v32 = vadd.f32 %v3380_v22, %v831_v31 }
 0x1fe   : > { %v2880_v33 = vpop.f32.mrf.mxu1 }
 0x1ff   : > { %v883_v36 = vmax.f32 %v832_v32, 0.0 }
 0x200   : > { %v836_v37 = vpop.f32.mrf.mxu1 }
 0x201   : > { %v3448_v38 = vpack.c.bf16 %v883_v36, %v882_v35  ;;  %v837_v40 = vadd.f32 %v3380_v22, %v836_v37 }
 0x202   : > { %v2883_v39 = vpop.f32.mrf.mxu1 }
 0x203   : > { %1443 = vmatmul.mubr.bf16.gmra.mxu0 %v3448_v38  ;;  %1604 = vmatmul.mubr.bf16.gmra.mxu1 %v3448_v38  ;;  %v884_v44 = vmax.f32 %v837_v40, 0.0 }
 0x204   : > { %v839_v41 = vpop.f32.mrf.mxu1  ;;  %1452 = vmatprep.mubr.bf16.mxu0 %v3100_v56  ;;  %1613 = vmatprep.mubr.bf16.mxu1 %v3100_v56 }
 0x205   : > { %v840_v42 = vadd.f32 %v3380_v22, %v839_v41 }
 0x206   : > { %v2884_v43 = vpop.f32.mrf.mxu1 }
 0x207   : > { %v885_v45 = vmax.f32 %v840_v42, 0.0 }
 0x208   : > { %v844_v47 = vpop.f32.mrf.mxu1 }
 0x209   : > { %v3456_v48 = vpack.c.bf16 %v885_v45, %v884_v44  ;;  %v845_v51 = vadd.f32 %v3380_v22, %v844_v47 }
 0x20a   : > { %v2887_v50 = vpop.f32.mrf.mxu1 }
 0x20b   : > { %1453 = vmatmul.mubr.bf16.gmra.mxu0 %v3456_v48  ;;  %1614 = vmatmul.mubr.bf16.gmra.mxu1 %v3456_v48  ;;  %v886_v55 = vmax.f32 %v845_v51, 0.0 }
 0x20c   : > { %v847_v52 = vpop.f32.mrf.mxu1  ;;  %1462 = vmatprep.mubr.bf16.mxu0 %v3100_v56  ;;  %1623 = vmatprep.mubr.bf16.mxu1 %v3100_v56 }
 0x20d   : > { %v848_v53 = vadd.f32 %v3380_v22, %v847_v52 }
 0x20e   : > { %v2888_v54 = vpop.f32.mrf.mxu1 }
 0x20f   : > { %v887_v57 = vmax.f32 %v848_v53, 0.0 }
 0x210   : > { %v852_v58 = vpop.f32.mrf.mxu1 }
 0x211   : > { %v3464_v60 = vpack.c.bf16 %v887_v57, %v886_v55  ;;  %v853_v62 = vadd.f32 %v3380_v22, %v852_v58 }
 0x212   : > { %v2891_v61 = vpop.f32.mrf.mxu1 }
 0x213   : > { %1463 = vmatmul.mubr.bf16.gmra.mxu0 %v3464_v60  ;;  %1624 = vmatmul.mubr.bf16.gmra.mxu1 %v3464_v60  ;;  %v888_v4 = vmax.f32 %v853_v62, 0.0 }
 0x214   : > { %v855_v63 = vpop.f32.mrf.mxu1  ;;  %1472 = vmatprep.mubr.bf16.mxu0 %v3100_v56  ;;  %1633 = vmatprep.mubr.bf16.mxu1 %v3100_v56 }
 0x215   : > { %v856_v2 = vadd.f32 %v3380_v22, %v855_v63 }
 0x216   : > { %v2892_v3 = vpop.f32.mrf.mxu1 }
 0x217   : > { %v889_v5 = vmax.f32 %v856_v2, 0.0 }
 0x218   : > { %v860_v6 = vpop.f32.mrf.mxu1 }
 0x219   : > { %v3472_v7 = vpack.c.bf16 %v889_v5, %v888_v4  ;;  %v861_v8 = vadd.f32 %v3380_v22, %v860_v6  ;;  %v970_v22 = vlaneseq }
 0x21a   : > { %v2895_v9 = vpop.f32.mrf.mxu1 }
 0x21b   : > { %v890_v11 = vmax.f32 %v861_v8, 0.0  ;;  %1473 = vmatmul.mubr.bf16.gmra.mxu0 %v3472_v7  ;;  %1634 = vmatmul.mubr.bf16.gmra.mxu1 %v3472_v7 }
 0x21c   : > { %v863_v12 = vpop.f32.mrf.mxu1  ;;  %1482 = vmatprep.mubr.bf16.mxu0 %v3100_v56  ;;  %1643 = vmatprep.mubr.bf16.mxu1 %v3100_v56 }
 0x21d   : > { %v3479_v14 = vpack.c.bf16 %v890_v11, %v890_v11 }
 0x21e   : > { %v2896_v13 = vpop.f32.mrf.mxu1 }
 0x223   : > { %1483 = vmatmul.mubr.bf16.gmra.mxu0 %v3479_v14  ;;  %1644 = vmatmul.mubr.bf16.gmra.mxu1 %v3479_v14 }
 0x224   : > { %1684 = vmatprep.mubr.bf16.mxu0 %v3100_v56  ;;  %1845 = vmatprep.mubr.bf16.mxu1 %v3100_v56 }
 0x22b   : > { %1685 = vmatmul.mubr.bf16.vlgmr.msra.gmra.mxu0 %v3384_v34  ;;  %1846 = vmatmul.mubr.bf16.vlgmr.msra.gmra.mxu1 %v3384_v34  ;;  %v3525_v34 = vshrl.u32 %v970_v22, 7 }
 0x22c   : > { %1694 = vmatprep.mubr.bf16.mxu0 %v3100_v56  ;;  %1855 = vmatprep.mubr.bf16.mxu1 %v3100_v56 }
 0x233   : > { %1695 = vmatmul.mubr.bf16.gmra.mxu0 %v3392_v59  ;;  %1856 = vmatmul.mubr.bf16.gmra.mxu1 %v3392_v59  ;;  %v972_v59 = vsub.s32 0, %v3525_v34 }
 0x234   : > { %1704 = vmatprep.mubr.bf16.mxu0 %v3100_v56  ;;  %1865 = vmatprep.mubr.bf16.mxu1 %v3100_v56 }
 0x23b   : > { %1705 = vmatmul.mubr.bf16.gmra.mxu0 %v3400_v21  ;;  %1866 = vmatmul.mubr.bf16.gmra.mxu1 %v3400_v21  ;;  %v980_v21 = vsub.s32 2, %v3525_v34 }
 0x23c   : > { %1714 = vmatprep.mubr.bf16.mxu0 %v3100_v56  ;;  %1875 = vmatprep.mubr.bf16.mxu1 %v3100_v56 }
 0x243   : > { %1715 = vmatmul.mubr.bf16.gmra.mxu0 %v3408_v46  ;;  %1876 = vmatmul.mubr.bf16.gmra.mxu1 %v3408_v46  ;;  %v3536_v46 = vld [vmem:[%s3939_s6] sm:$0xff] }
 0x244   : > { %1724 = vmatprep.mubr.bf16.mxu0 %v3100_v56  ;;  %1885 = vmatprep.mubr.bf16.mxu1 %v3100_v56  ;;  %v3541_v15 = vrot.slane %v3536_v46, %v972_v59  ;;  %v3544_v16 = vrot.slane %v3536_v46, %v980_v21 }
 0x24b   : > { %1725 = vmatmul.mubr.bf16.gmra.mxu0 %v3416_v1  ;;  %1886 = vmatmul.mubr.bf16.gmra.mxu1 %v3416_v1  ;;  %v976_v1 = vsub.s32 1, %v3525_v34 }
 0x24c   : > { %1734 = vmatprep.mubr.bf16.mxu0 %v3100_v56  ;;  %1895 = vmatprep.mubr.bf16.mxu1 %v3100_v56 }
 0x253   : > { %1735 = vmatmul.mubr.bf16.gmra.mxu0 %v3424_v10  ;;  %1896 = vmatmul.mubr.bf16.gmra.mxu1 %v3424_v10  ;;  %v984_v10 = vsub.s32 3, %v3525_v34 }
 0x254   : > { %1744 = vmatprep.mubr.bf16.mxu0 %v3100_v56  ;;  %1905 = vmatprep.mubr.bf16.mxu1 %v3100_v56 }
 0x255   : > { %v3552_v20 = vrot.slane %v3536_v46, %v984_v10 }
 0x25b   : > { %1745 = vmatmul.mubr.bf16.gmra.mxu0 %v3432_v19  ;;  %1906 = vmatmul.mubr.bf16.gmra.mxu1 %v3432_v19  ;;  %v3549_v19 = vrot.slane %v3536_v46, %v976_v1 }
 0x25c   : > { %1754 = vmatprep.mubr.bf16.mxu0 %v3100_v56  ;;  %1915 = vmatprep.mubr.bf16.mxu1 %v3100_v56 }
 0x263   : > { %1755 = vmatmul.mubr.bf16.gmra.mxu0 %v3440_v28  ;;  %1916 = vmatmul.mubr.bf16.gmra.mxu1 %v3440_v28 }
 0x264   : > { %1764 = vmatprep.mubr.bf16.mxu0 %v3100_v56  ;;  %1925 = vmatprep.mubr.bf16.mxu1 %v3100_v56 }
 0x26b   : > { %1765 = vmatmul.mubr.bf16.gmra.mxu0 %v3448_v38  ;;  %1926 = vmatmul.mubr.bf16.gmra.mxu1 %v3448_v38 }
 0x26c   : > { %1774 = vmatprep.mubr.bf16.mxu0 %v3100_v56  ;;  %1935 = vmatprep.mubr.bf16.mxu1 %v3100_v56 }
 0x273   : > { %1775 = vmatmul.mubr.bf16.gmra.mxu0 %v3456_v48  ;;  %1936 = vmatmul.mubr.bf16.gmra.mxu1 %v3456_v48 }
 0x274   : > { %1784 = vmatprep.mubr.bf16.mxu0 %v3100_v56  ;;  %1945 = vmatprep.mubr.bf16.mxu1 %v3100_v56 }
 0x27b   : > { %1785 = vmatmul.mubr.bf16.gmra.mxu0 %v3464_v60  ;;  %1946 = vmatmul.mubr.bf16.gmra.mxu1 %v3464_v60 }
 0x27c   : > { %1794 = vmatprep.mubr.bf16.mxu0 %v3100_v56  ;;  %1955 = vmatprep.mubr.bf16.mxu1 %v3100_v56 }
 0x283   : > { %v1364_v17 = vpop.f32.mrf.mxu0  ;;  %v1525_v18 = vpop.f32.mrf.mxu1  ;;  %1795 = vmatmul.mubr.bf16.gmra.mxu0 %v3472_v7  ;;  %1956 = vmatmul.mubr.bf16.gmra.mxu1 %v3472_v7 }
 0x284   : > { %1804 = vmatprep.mubr.bf16.mxu0 %v3100_v56  ;;  %1965 = vmatprep.mubr.bf16.mxu1 %v3100_v56  ;;  %v1365_v49 = vadd.f32 %v1364_v17, %v3541_v15  ;;  %v1526_v23 = vadd.f32 %v1525_v18, %v3544_v16 }
 0x285   : > { %v1366_v24 = vpop.f32.mrf.mxu0  ;;  %v1527_v25 = vpop.f32.mrf.mxu1 }
 0x286   : > { %v1367_v26 = vadd.f32 %v1366_v24, %v3549_v19  ;;  %v1528_v27 = vadd.f32 %v1527_v25, %v3552_v20  ;;  %v1974_v31 = vmax.f32 %v1365_v49, 0.0  ;;  %v1976_v32 = vmax.f32 %v1526_v23, 0.0 }
 0x287   : > { %v1368_v0 = vpop.f32.mrf.mxu0  ;;  %v1529_v28 = vpop.f32.mrf.mxu1 }
 0x288   : > { %v1369_v29 = vadd.f32 %v1368_v0, %v3541_v15  ;;  %v1530_v30 = vadd.f32 %v1529_v28, %v3544_v16  ;;  %v1975_v39 = vmax.f32 %v1367_v26, 0.0  ;;  %v1977_v40 = vmax.f32 %v1528_v27, 0.0 }
 0x289   : > { %v1370_v33 = vpop.f32.mrf.mxu0  ;;  %v1531_v56 = vpop.f32.mrf.mxu1 }
 0x28a   : > { %v1982_v35 = vmax.f32 %v1369_v29, 0.0  ;;  %v1984_v36 = vmax.f32 %v1530_v30, 0.0  ;;  %v1371_v37 = vadd.f32 %v1370_v33, %v3549_v19  ;;  %v1532_v38 = vadd.f32 %v1531_v56, %v3552_v20 }
 0x28b   : > { %v1374_v41 = vpop.f32.mrf.mxu0  ;;  %v1535_v42 = vpop.f32.mrf.mxu1  ;;  %1805 = vmatmul.mubr.bf16.gmra.mxu0 %v3479_v14  ;;  %1966 = vmatmul.mubr.bf16.gmra.mxu1 %v3479_v14 }
 0x28c   : > { %v2174_v43 = vmax.f32 %v1974_v31, %v1982_v35  ;;  %v2222_v44 = vmax.f32 %v1976_v32, %v1984_v36  ;;  %v1983_v45 = vmax.f32 %v1371_v37, 0.0  ;;  %v1985_v47 = vmax.f32 %v1532_v38, 0.0 }
 0x28d   : > { %v1375_v48 = vadd.f32 %v1374_v41, %v3541_v15  ;;  %v1536_v50 = vadd.f32 %v1535_v42, %v3544_v16  ;;  %v1376_v51 = vpop.f32.mrf.mxu0  ;;  %v1537_v52 = vpop.f32.mrf.mxu1 }
 0x28e   : > { %v2198_v53 = vmax.f32 %v1975_v39, %v1983_v45  ;;  %v2246_v54 = vmax.f32 %v1977_v40, %v1985_v47  ;;  %v1377_v55 = vadd.f32 %v1376_v51, %v3549_v19  ;;  %v1538_v57 = vadd.f32 %v1537_v52, %v3552_v20 }
 0x28f   : > { %v1990_v58 = vmax.f32 %v1375_v48, 0.0  ;;  %v1992_v60 = vmax.f32 %v1536_v50, 0.0  ;;  %v1378_v61 = vpop.f32.mrf.mxu0  ;;  %v1539_v62 = vpop.f32.mrf.mxu1 }
 0x290   : > { %v1991_v63 = vmax.f32 %v1377_v55, 0.0  ;;  %v1993_v2 = vmax.f32 %v1538_v57, 0.0  ;;  %v1379_v3 = vadd.f32 %v1378_v61, %v3541_v15  ;;  %v1540_v4 = vadd.f32 %v1539_v62, %v3544_v16 }
 0x291   : > { %v2175_v5 = vmax.f32 %v2174_v43, %v1990_v58  ;;  %v2223_v6 = vmax.f32 %v2222_v44, %v1992_v60  ;;  %v1380_v7 = vpop.f32.mrf.mxu0  ;;  %v1541_v8 = vpop.f32.mrf.mxu1 }
 0x292   : > { %v2199_v9 = vmax.f32 %v2198_v53, %v1991_v63  ;;  %v2247_v11 = vmax.f32 %v2246_v54, %v1993_v2  ;;  %v1998_v12 = vmax.f32 %v1379_v3, 0.0  ;;  %v2000_v13 = vmax.f32 %v1540_v4, 0.0 }
 0x293   : > { %v1381_v14 = vadd.f32 %v1380_v7, %v3549_v19  ;;  %v1542_v22 = vadd.f32 %v1541_v8, %v3552_v20  ;;  %v1384_v59 = vpop.f32.mrf.mxu0  ;;  %v1545_v21 = vpop.f32.mrf.mxu1 }
 0x294   : > { %v2176_v1 = vmax.f32 %v2175_v5, %v1998_v12  ;;  %v2224_v10 = vmax.f32 %v2223_v6, %v2000_v13  ;;  %v1385_v17 = vadd.f32 %v1384_v59, %v3541_v15  ;;  %v1546_v18 = vadd.f32 %v1545_v21, %v3544_v16 }
 0x295   : > { %v1999_v49 = vmax.f32 %v1381_v14, 0.0  ;;  %v2001_v23 = vmax.f32 %v1542_v22, 0.0  ;;  %v1386_v24 = vpop.f32.mrf.mxu0  ;;  %v1547_v25 = vpop.f32.mrf.mxu1 }
 0x296   : > { %v2006_v26 = vmax.f32 %v1385_v17, 0.0  ;;  %v2008_v27 = vmax.f32 %v1546_v18, 0.0  ;;  %v1387_v0 = vadd.f32 %v1386_v24, %v3549_v19  ;;  %v1548_v28 = vadd.f32 %v1547_v25, %v3552_v20 }
 0x297   : > { %v2200_v29 = vmax.f32 %v2199_v9, %v1999_v49  ;;  %v2248_v30 = vmax.f32 %v2247_v11, %v2001_v23  ;;  %v1388_v31 = vpop.f32.mrf.mxu0  ;;  %v1549_v32 = vpop.f32.mrf.mxu1 }
 0x298   : > { %v2177_v33 = vmax.f32 %v2176_v1, %v2006_v26  ;;  %v2225_v56 = vmax.f32 %v2224_v10, %v2008_v27  ;;  %v2007_v35 = vmax.f32 %v1387_v0, 0.0  ;;  %v2009_v36 = vmax.f32 %v1548_v28, 0.0 }
 0x299   : > { %v1389_v37 = vadd.f32 %v1388_v31, %v3541_v15  ;;  %v1550_v38 = vadd.f32 %v1549_v32, %v3544_v16  ;;  %v1390_v39 = vpop.f32.mrf.mxu0  ;;  %v1551_v40 = vpop.f32.mrf.mxu1 }
 0x29a   : > { %v2201_v41 = vmax.f32 %v2200_v29, %v2007_v35  ;;  %v2249_v42 = vmax.f32 %v2248_v30, %v2009_v36  ;;  %v1391_v43 = vadd.f32 %v1390_v39, %v3549_v19  ;;  %v1552_v44 = vadd.f32 %v1551_v40, %v3552_v20 }
 0x29b   : > { %v2014_v45 = vmax.f32 %v1389_v37, 0.0  ;;  %v2016_v47 = vmax.f32 %v1550_v38, 0.0  ;;  %v1394_v48 = vpop.f32.mrf.mxu0  ;;  %v1555_v50 = vpop.f32.mrf.mxu1 }
 0x29c   : > { %v2015_v51 = vmax.f32 %v1391_v43, 0.0  ;;  %v2017_v52 = vmax.f32 %v1552_v44, 0.0  ;;  %v1395_v53 = vadd.f32 %v1394_v48, %v3541_v15  ;;  %v1556_v54 = vadd.f32 %v1555_v50, %v3544_v16 }
 0x29d   : > { %v2178_v55 = vmax.f32 %v2177_v33, %v2014_v45  ;;  %v2226_v57 = vmax.f32 %v2225_v56, %v2016_v47  ;;  %v1396_v58 = vpop.f32.mrf.mxu0  ;;  %v1557_v60 = vpop.f32.mrf.mxu1 }
 0x29e   : > { %v2202_v61 = vmax.f32 %v2201_v41, %v2015_v51  ;;  %v2250_v62 = vmax.f32 %v2249_v42, %v2017_v52  ;;  %v2022_v63 = vmax.f32 %v1395_v53, 0.0  ;;  %v2024_v2 = vmax.f32 %v1556_v54, 0.0 }
 0x29f   : > { %v1397_v3 = vadd.f32 %v1396_v58, %v3549_v19  ;;  %v1558_v4 = vadd.f32 %v1557_v60, %v3552_v20  ;;  %v1398_v5 = vpop.f32.mrf.mxu0  ;;  %v1559_v6 = vpop.f32.mrf.mxu1 }
 0x2a0   : > { %v2179_v7 = vmax.f32 %v2178_v55, %v2022_v63  ;;  %v2227_v8 = vmax.f32 %v2226_v57, %v2024_v2  ;;  %v1399_v9 = vadd.f32 %v1398_v5, %v3541_v15  ;;  %v1560_v11 = vadd.f32 %v1559_v6, %v3544_v16 }
 0x2a1   : > { %v2023_v12 = vmax.f32 %v1397_v3, 0.0  ;;  %v2025_v13 = vmax.f32 %v1558_v4, 0.0  ;;  %v1400_v14 = vpop.f32.mrf.mxu0  ;;  %v1561_v22 = vpop.f32.mrf.mxu1 }
 0x2a2   : > { %v2030_v59 = vmax.f32 %v1399_v9, 0.0  ;;  %v2032_v21 = vmax.f32 %v1560_v11, 0.0  ;;  %v1401_v1 = vadd.f32 %v1400_v14, %v3549_v19  ;;  %v1562_v10 = vadd.f32 %v1561_v22, %v3552_v20 }
 0x2a3   : > { %v2203_v17 = vmax.f32 %v2202_v61, %v2023_v12  ;;  %v2251_v18 = vmax.f32 %v2250_v62, %v2025_v13  ;;  %v1404_v49 = vpop.f32.mrf.mxu0  ;;  %v1565_v23 = vpop.f32.mrf.mxu1 }
 0x2a4   : > { %v2180_v24 = vmax.f32 %v2179_v7, %v2030_v59  ;;  %v2228_v25 = vmax.f32 %v2227_v8, %v2032_v21  ;;  %v2031_v26 = vmax.f32 %v1401_v1, 0.0  ;;  %v2033_v27 = vmax.f32 %v1562_v10, 0.0 }
 0x2a5   : > { %v1405_v0 = vadd.f32 %v1404_v49, %v3541_v15  ;;  %v1566_v28 = vadd.f32 %v1565_v23, %v3544_v16  ;;  %v1406_v29 = vpop.f32.mrf.mxu0  ;;  %v1567_v30 = vpop.f32.mrf.mxu1 }
 0x2a6   : > { %v2204_v31 = vmax.f32 %v2203_v17, %v2031_v26  ;;  %v2252_v32 = vmax.f32 %v2251_v18, %v2033_v27  ;;  %v1407_v33 = vadd.f32 %v1406_v29, %v3549_v19  ;;  %v1568_v56 = vadd.f32 %v1567_v30, %v3552_v20 }
 0x2a7   : > { %v2038_v35 = vmax.f32 %v1405_v0, 0.0  ;;  %v2040_v36 = vmax.f32 %v1566_v28, 0.0  ;;  %v1408_v37 = vpop.f32.mrf.mxu0  ;;  %v1569_v38 = vpop.f32.mrf.mxu1 }
 0x2a8   : > { %v2039_v39 = vmax.f32 %v1407_v33, 0.0  ;;  %v2041_v40 = vmax.f32 %v1568_v56, 0.0  ;;  %v1409_v41 = vadd.f32 %v1408_v37, %v3541_v15  ;;  %v1570_v42 = vadd.f32 %v1569_v38, %v3544_v16 }
 0x2a9   : > { %v2181_v43 = vmax.f32 %v2180_v24, %v2038_v35  ;;  %v2229_v44 = vmax.f32 %v2228_v25, %v2040_v36  ;;  %v1410_v45 = vpop.f32.mrf.mxu0  ;;  %v1571_v47 = vpop.f32.mrf.mxu1 }
 0x2aa   : > { %v2205_v48 = vmax.f32 %v2204_v31, %v2039_v39  ;;  %v2253_v50 = vmax.f32 %v2252_v32, %v2041_v40  ;;  %v2046_v51 = vmax.f32 %v1409_v41, 0.0  ;;  %v2048_v52 = vmax.f32 %v1570_v42, 0.0 }
 0x2ab   : > { %v1411_v53 = vadd.f32 %v1410_v45, %v3549_v19  ;;  %v1572_v54 = vadd.f32 %v1571_v47, %v3552_v20  ;;  %v1414_v55 = vpop.f32.mrf.mxu0  ;;  %v1575_v57 = vpop.f32.mrf.mxu1 }
 0x2ac   : > { %v2182_v58 = vmax.f32 %v2181_v43, %v2046_v51  ;;  %v2230_v60 = vmax.f32 %v2229_v44, %v2048_v52  ;;  %v1415_v61 = vadd.f32 %v1414_v55, %v3541_v15  ;;  %v1576_v62 = vadd.f32 %v1575_v57, %v3544_v16 }
 0x2ad   : > { %v2047_v63 = vmax.f32 %v1411_v53, 0.0  ;;  %v2049_v2 = vmax.f32 %v1572_v54, 0.0  ;;  %v1416_v3 = vpop.f32.mrf.mxu0  ;;  %v1577_v4 = vpop.f32.mrf.mxu1 }
 0x2ae   : > { %v2054_v5 = vmax.f32 %v1415_v61, 0.0  ;;  %v2056_v6 = vmax.f32 %v1576_v62, 0.0  ;;  %v1417_v7 = vadd.f32 %v1416_v3, %v3549_v19  ;;  %v1578_v8 = vadd.f32 %v1577_v4, %v3552_v20 }
 0x2af   : > { %v2206_v9 = vmax.f32 %v2205_v48, %v2047_v63  ;;  %v2254_v11 = vmax.f32 %v2253_v50, %v2049_v2  ;;  %v1418_v12 = vpop.f32.mrf.mxu0  ;;  %v1579_v13 = vpop.f32.mrf.mxu1 }
 0x2b0   : > { %v2183_v14 = vmax.f32 %v2182_v58, %v2054_v5  ;;  %v2231_v22 = vmax.f32 %v2230_v60, %v2056_v6  ;;  %v2055_v59 = vmax.f32 %v1417_v7, 0.0  ;;  %v2057_v21 = vmax.f32 %v1578_v8, 0.0 }
 0x2b1   : > { %v1419_v1 = vadd.f32 %v1418_v12, %v3541_v15  ;;  %v1580_v10 = vadd.f32 %v1579_v13, %v3544_v16  ;;  %v1420_v17 = vpop.f32.mrf.mxu0  ;;  %v1581_v18 = vpop.f32.mrf.mxu1 }
 0x2b2   : > { %v2207_v49 = vmax.f32 %v2206_v9, %v2055_v59  ;;  %v2255_v23 = vmax.f32 %v2254_v11, %v2057_v21  ;;  %v1421_v24 = vadd.f32 %v1420_v17, %v3549_v19  ;;  %v1582_v25 = vadd.f32 %v1581_v18, %v3552_v20 }
 0x2b3   : > { %v2062_v26 = vmax.f32 %v1419_v1, 0.0  ;;  %v2064_v27 = vmax.f32 %v1580_v10, 0.0  ;;  %v1424_v0 = vpop.f32.mrf.mxu0  ;;  %v1585_v28 = vpop.f32.mrf.mxu1 }
 0x2b4   : > { %v2063_v29 = vmax.f32 %v1421_v24, 0.0  ;;  %v2065_v30 = vmax.f32 %v1582_v25, 0.0  ;;  %v1425_v31 = vadd.f32 %v1424_v0, %v3541_v15  ;;  %v1586_v32 = vadd.f32 %v1585_v28, %v3544_v16 }
 0x2b5   : > { %v2184_v33 = vmax.f32 %v2183_v14, %v2062_v26  ;;  %v2232_v56 = vmax.f32 %v2231_v22, %v2064_v27  ;;  %v1426_v35 = vpop.f32.mrf.mxu0  ;;  %v1587_v36 = vpop.f32.mrf.mxu1 }
 0x2b6   : > { %v2208_v37 = vmax.f32 %v2207_v49, %v2063_v29  ;;  %v2256_v38 = vmax.f32 %v2255_v23, %v2065_v30  ;;  %v2070_v39 = vmax.f32 %v1425_v31, 0.0  ;;  %v2072_v40 = vmax.f32 %v1586_v32, 0.0 }
 0x2b7   : > { %v1427_v41 = vadd.f32 %v1426_v35, %v3549_v19  ;;  %v1588_v42 = vadd.f32 %v1587_v36, %v3552_v20  ;;  %v1428_v43 = vpop.f32.mrf.mxu0  ;;  %v1589_v44 = vpop.f32.mrf.mxu1 }
 0x2b8   : > { %v2185_v45 = vmax.f32 %v2184_v33, %v2070_v39  ;;  %v2233_v47 = vmax.f32 %v2232_v56, %v2072_v40  ;;  %v1429_v48 = vadd.f32 %v1428_v43, %v3541_v15  ;;  %v1590_v50 = vadd.f32 %v1589_v44, %v3544_v16 }
 0x2b9   : > { %v2071_v51 = vmax.f32 %v1427_v41, 0.0  ;;  %v2073_v52 = vmax.f32 %v1588_v42, 0.0  ;;  %v1430_v53 = vpop.f32.mrf.mxu0  ;;  %v1591_v54 = vpop.f32.mrf.mxu1 }
 0x2ba   : > { %v2078_v55 = vmax.f32 %v1429_v48, 0.0  ;;  %v2080_v57 = vmax.f32 %v1590_v50, 0.0  ;;  %v1431_v58 = vadd.f32 %v1430_v53, %v3549_v19  ;;  %v1592_v60 = vadd.f32 %v1591_v54, %v3552_v20 }
 0x2bb   : > { %v2209_v61 = vmax.f32 %v2208_v37, %v2071_v51  ;;  %v2257_v62 = vmax.f32 %v2256_v38, %v2073_v52  ;;  %v1434_v63 = vpop.f32.mrf.mxu0  ;;  %v1595_v2 = vpop.f32.mrf.mxu1 }
 0x2bc   : > { %v2186_v3 = vmax.f32 %v2185_v45, %v2078_v55  ;;  %v2234_v4 = vmax.f32 %v2233_v47, %v2080_v57  ;;  %v2079_v5 = vmax.f32 %v1431_v58, 0.0  ;;  %v2081_v6 = vmax.f32 %v1592_v60, 0.0 }
 0x2bd   : > { %v1435_v7 = vadd.f32 %v1434_v63, %v3541_v15  ;;  %v1596_v8 = vadd.f32 %v1595_v2, %v3544_v16  ;;  %v1436_v9 = vpop.f32.mrf.mxu0  ;;  %v1597_v11 = vpop.f32.mrf.mxu1 }
 0x2be   : > { %v2210_v12 = vmax.f32 %v2209_v61, %v2079_v5  ;;  %v2258_v13 = vmax.f32 %v2257_v62, %v2081_v6  ;;  %v1437_v14 = vadd.f32 %v1436_v9, %v3549_v19  ;;  %v1598_v22 = vadd.f32 %v1597_v11, %v3552_v20 }
 0x2bf   : > { %v2086_v59 = vmax.f32 %v1435_v7, 0.0  ;;  %v2088_v21 = vmax.f32 %v1596_v8, 0.0  ;;  %v1438_v1 = vpop.f32.mrf.mxu0  ;;  %v1599_v10 = vpop.f32.mrf.mxu1 }
 0x2c0   : > { %v2087_v17 = vmax.f32 %v1437_v14, 0.0  ;;  %v2089_v18 = vmax.f32 %v1598_v22, 0.0  ;;  %v1439_v49 = vadd.f32 %v1438_v1, %v3541_v15  ;;  %v1600_v23 = vadd.f32 %v1599_v10, %v3544_v16 }
 0x2c1   : > { %v2187_v24 = vmax.f32 %v2186_v3, %v2086_v59  ;;  %v2235_v25 = vmax.f32 %v2234_v4, %v2088_v21  ;;  %v1440_v26 = vpop.f32.mrf.mxu0  ;;  %v1601_v27 = vpop.f32.mrf.mxu1 }
 0x2c2   : > { %v2211_v0 = vmax.f32 %v2210_v12, %v2087_v17  ;;  %v2259_v28 = vmax.f32 %v2258_v13, %v2089_v18  ;;  %v2094_v29 = vmax.f32 %v1439_v49, 0.0  ;;  %v2096_v30 = vmax.f32 %v1600_v23, 0.0 }
 0x2c3   : > { %v1441_v31 = vadd.f32 %v1440_v26, %v3549_v19  ;;  %v1602_v32 = vadd.f32 %v1601_v27, %v3552_v20  ;;  %v1444_v33 = vpop.f32.mrf.mxu0  ;;  %v1605_v56 = vpop.f32.mrf.mxu1 }
 0x2c4   : > { %v2188_v35 = vmax.f32 %v2187_v24, %v2094_v29  ;;  %v2236_v36 = vmax.f32 %v2235_v25, %v2096_v30  ;;  %v1445_v37 = vadd.f32 %v1444_v33, %v3541_v15  ;;  %v1606_v38 = vadd.f32 %v1605_v56, %v3544_v16 }
 0x2c5   : > { %v2095_v39 = vmax.f32 %v1441_v31, 0.0  ;;  %v2097_v40 = vmax.f32 %v1602_v32, 0.0  ;;  %v1446_v41 = vpop.f32.mrf.mxu0  ;;  %v1607_v42 = vpop.f32.mrf.mxu1 }
 0x2c6   : > { %v2102_v43 = vmax.f32 %v1445_v37, 0.0  ;;  %v2104_v44 = vmax.f32 %v1606_v38, 0.0  ;;  %v1447_v45 = vadd.f32 %v1446_v41, %v3549_v19  ;;  %v1608_v47 = vadd.f32 %v1607_v42, %v3552_v20 }
 0x2c7   : > { %v2212_v48 = vmax.f32 %v2211_v0, %v2095_v39  ;;  %v2260_v50 = vmax.f32 %v2259_v28, %v2097_v40  ;;  %v1448_v51 = vpop.f32.mrf.mxu0  ;;  %v1609_v52 = vpop.f32.mrf.mxu1 }
 0x2c8   : > { %v2189_v53 = vmax.f32 %v2188_v35, %v2102_v43  ;;  %v2237_v54 = vmax.f32 %v2236_v36, %v2104_v44  ;;  %v2103_v55 = vmax.f32 %v1447_v45, 0.0  ;;  %v2105_v57 = vmax.f32 %v1608_v47, 0.0 }
 0x2c9   : > { %v1449_v58 = vadd.f32 %v1448_v51, %v3541_v15  ;;  %v1610_v60 = vadd.f32 %v1609_v52, %v3544_v16  ;;  %v1450_v61 = vpop.f32.mrf.mxu0  ;;  %v1611_v62 = vpop.f32.mrf.mxu1 }
 0x2ca   : > { %v2213_v63 = vmax.f32 %v2212_v48, %v2103_v55  ;;  %v2261_v2 = vmax.f32 %v2260_v50, %v2105_v57  ;;  %v1451_v3 = vadd.f32 %v1450_v61, %v3549_v19  ;;  %v1612_v4 = vadd.f32 %v1611_v62, %v3552_v20 }
 0x2cb   : > { %v2110_v5 = vmax.f32 %v1449_v58, 0.0  ;;  %v2112_v6 = vmax.f32 %v1610_v60, 0.0  ;;  %v1454_v7 = vpop.f32.mrf.mxu0  ;;  %v1615_v8 = vpop.f32.mrf.mxu1 }
 0x2cc   : > { %v2111_v9 = vmax.f32 %v1451_v3, 0.0  ;;  %v2113_v11 = vmax.f32 %v1612_v4, 0.0  ;;  %v1455_v12 = vadd.f32 %v1454_v7, %v3541_v15  ;;  %v1616_v13 = vadd.f32 %v1615_v8, %v3544_v16 }
 0x2cd   : > { %v2190_v14 = vmax.f32 %v2189_v53, %v2110_v5  ;;  %v2238_v22 = vmax.f32 %v2237_v54, %v2112_v6  ;;  %v1456_v59 = vpop.f32.mrf.mxu0  ;;  %v1617_v21 = vpop.f32.mrf.mxu1 }
 0x2ce   : > { %v2214_v1 = vmax.f32 %v2213_v63, %v2111_v9  ;;  %v2262_v10 = vmax.f32 %v2261_v2, %v2113_v11  ;;  %v2118_v17 = vmax.f32 %v1455_v12, 0.0  ;;  %v2120_v18 = vmax.f32 %v1616_v13, 0.0 }
 0x2cf   : > { %v1457_v49 = vadd.f32 %v1456_v59, %v3549_v19  ;;  %v1618_v23 = vadd.f32 %v1617_v21, %v3552_v20  ;;  %v1458_v24 = vpop.f32.mrf.mxu0  ;;  %v1619_v25 = vpop.f32.mrf.mxu1 }
 0x2d0   : > { %v2191_v26 = vmax.f32 %v2190_v14, %v2118_v17  ;;  %v2239_v27 = vmax.f32 %v2238_v22, %v2120_v18  ;;  %v1459_v0 = vadd.f32 %v1458_v24, %v3541_v15  ;;  %v1620_v28 = vadd.f32 %v1619_v25, %v3544_v16 }
 0x2d1   : > { %v2119_v29 = vmax.f32 %v1457_v49, 0.0  ;;  %v2121_v30 = vmax.f32 %v1618_v23, 0.0  ;;  %v1460_v31 = vpop.f32.mrf.mxu0  ;;  %v1621_v32 = vpop.f32.mrf.mxu1 }
 0x2d2   : > { %v2126_v33 = vmax.f32 %v1459_v0, 0.0  ;;  %v2128_v56 = vmax.f32 %v1620_v28, 0.0  ;;  %v1461_v35 = vadd.f32 %v1460_v31, %v3549_v19  ;;  %v1622_v36 = vadd.f32 %v1621_v32, %v3552_v20 }
 0x2d3   : > { %v2215_v37 = vmax.f32 %v2214_v1, %v2119_v29  ;;  %v2263_v38 = vmax.f32 %v2262_v10, %v2121_v30  ;;  %v1464_v39 = vpop.f32.mrf.mxu0  ;;  %v1625_v40 = vpop.f32.mrf.mxu1 }
 0x2d4   : > { %v2192_v41 = vmax.f32 %v2191_v26, %v2126_v33  ;;  %v2240_v42 = vmax.f32 %v2239_v27, %v2128_v56  ;;  %v2127_v43 = vmax.f32 %v1461_v35, 0.0  ;;  %v2129_v44 = vmax.f32 %v1622_v36, 0.0 }
 0x2d5   : > { %v1465_v45 = vadd.f32 %v1464_v39, %v3541_v15  ;;  %v1626_v47 = vadd.f32 %v1625_v40, %v3544_v16  ;;  %v1466_v48 = vpop.f32.mrf.mxu0  ;;  %v1627_v50 = vpop.f32.mrf.mxu1 }
 0x2d6   : > { %v2216_v51 = vmax.f32 %v2215_v37, %v2127_v43  ;;  %v2264_v52 = vmax.f32 %v2263_v38, %v2129_v44  ;;  %v1467_v53 = vadd.f32 %v1466_v48, %v3549_v19  ;;  %v1628_v54 = vadd.f32 %v1627_v50, %v3552_v20 }
 0x2d7   : > { %v2134_v55 = vmax.f32 %v1465_v45, 0.0  ;;  %v2136_v57 = vmax.f32 %v1626_v47, 0.0  ;;  %v1468_v58 = vpop.f32.mrf.mxu0  ;;  %v1629_v60 = vpop.f32.mrf.mxu1 }
 0x2d8   : > { %v2135_v61 = vmax.f32 %v1467_v53, 0.0  ;;  %v2137_v62 = vmax.f32 %v1628_v54, 0.0  ;;  %v1469_v63 = vadd.f32 %v1468_v58, %v3541_v15  ;;  %v1630_v2 = vadd.f32 %v1629_v60, %v3544_v16 }
 0x2d9   : > { %v2193_v3 = vmax.f32 %v2192_v41, %v2134_v55  ;;  %v2241_v4 = vmax.f32 %v2240_v42, %v2136_v57  ;;  %v1470_v5 = vpop.f32.mrf.mxu0  ;;  %v1631_v6 = vpop.f32.mrf.mxu1 }
 0x2da   : > { %v2217_v7 = vmax.f32 %v2216_v51, %v2135_v61  ;;  %v2265_v8 = vmax.f32 %v2264_v52, %v2137_v62  ;;  %v2142_v9 = vmax.f32 %v1469_v63, 0.0  ;;  %v2144_v11 = vmax.f32 %v1630_v2, 0.0 }
 0x2db   : > { %v1471_v12 = vadd.f32 %v1470_v5, %v3549_v19  ;;  %v1632_v13 = vadd.f32 %v1631_v6, %v3552_v20  ;;  %v1474_v14 = vpop.f32.mrf.mxu0  ;;  %v1635_v22 = vpop.f32.mrf.mxu1 }
 0x2dc   : > { %v2194_v59 = vmax.f32 %v2193_v3, %v2142_v9  ;;  %v2242_v21 = vmax.f32 %v2241_v4, %v2144_v11  ;;  %v1475_v1 = vadd.f32 %v1474_v14, %v3541_v15  ;;  %v1636_v10 = vadd.f32 %v1635_v22, %v3544_v16 }
 0x2dd   : > { %v2143_v17 = vmax.f32 %v1471_v12, 0.0  ;;  %v2145_v18 = vmax.f32 %v1632_v13, 0.0  ;;  %v1476_v49 = vpop.f32.mrf.mxu0  ;;  %v1637_v23 = vpop.f32.mrf.mxu1 }
 0x2de   : > { %v2150_v24 = vmax.f32 %v1475_v1, 0.0  ;;  %v2152_v25 = vmax.f32 %v1636_v10, 0.0  ;;  %v1477_v26 = vadd.f32 %v1476_v49, %v3549_v19  ;;  %v1638_v27 = vadd.f32 %v1637_v23, %v3552_v20 }
 0x2df   : > { %v2218_v0 = vmax.f32 %v2217_v7, %v2143_v17  ;;  %v2266_v28 = vmax.f32 %v2265_v8, %v2145_v18  ;;  %v1478_v29 = vpop.f32.mrf.mxu0  ;;  %v1639_v30 = vpop.f32.mrf.mxu1  ;;  %v3101_v49 = vmov 1966171168  }
 0x2e0   : > { %v2195_v31 = vmax.f32 %v2194_v59, %v2150_v24  ;;  %v2243_v32 = vmax.f32 %v2242_v21, %v2152_v25  ;;  %v2151_v33 = vmax.f32 %v1477_v26, 0.0  ;;  %v2153_v56 = vmax.f32 %v1638_v27, 0.0 }
 0x2e1   : > { %v1479_v35 = vadd.f32 %v1478_v29, %v3541_v15  ;;  %v1640_v36 = vadd.f32 %v1639_v30, %v3544_v16  ;;  %v1480_v37 = vpop.f32.mrf.mxu0  ;;  %v1641_v38 = vpop.f32.mrf.mxu1  ;;  %v2474_v23 = vunpack.c.l.s4 %v3101_v49 }
 0x2e2   : > { %v2219_v39 = vmax.f32 %v2218_v0, %v2151_v33  ;;  %v2267_v40 = vmax.f32 %v2266_v28, %v2153_v56  ;;  %v1481_v41 = vadd.f32 %v1480_v37, %v3549_v19  ;;  %v1642_v42 = vadd.f32 %v1641_v38, %v3552_v20 }
 0x2e3   : > { %v2158_v43 = vmax.f32 %v1479_v35, 0.0  ;;  %v2160_v44 = vmax.f32 %v1640_v36, 0.0  ;;  %v1484_v45 = vpop.f32.mrf.mxu0  ;;  %v1645_v47 = vpop.f32.mrf.mxu1  ;;  %v2475_v33 = vunpack.c.0.s8 %v2474_v23 }
 0x2e4   : > { %v2159_v48 = vmax.f32 %v1481_v41, 0.0  ;;  %v2161_v50 = vmax.f32 %v1642_v42, 0.0  ;;  %v1485_v51 = vadd.f32 %v1484_v45, %v3541_v15  ;;  %v1646_v52 = vadd.f32 %v1645_v47, %v3544_v16 }
 0x2e5   : > { %v2196_v53 = vmax.f32 %v2195_v31, %v2158_v43  ;;  %v2244_v54 = vmax.f32 %v2243_v32, %v2160_v44  ;;  %v1486_v55 = vpop.f32.mrf.mxu0  ;;  %v1647_v57 = vpop.f32.mrf.mxu1  ;;  %v3667_v44 = vsub.s32 %v2475_v33, %v3525_v34 }
 0x2e6   : > { %v2220_v58 = vmax.f32 %v2219_v39, %v2159_v48  ;;  %v2268_v60 = vmax.f32 %v2267_v40, %v2161_v50  ;;  %v2166_v61 = vmax.f32 %v1485_v51, 0.0  ;;  %v2168_v62 = vmax.f32 %v1646_v52, 0.0 }
 0x2e7   : > { %v1487_v63 = vadd.f32 %v1486_v55, %v3549_v19  ;;  %v1648_v2 = vadd.f32 %v1647_v57, %v3552_v20  ;;  %v1488_v3 = vpop.f32.mrf.mxu0  ;;  %v1649_v4 = vpop.f32.mrf.mxu1 }
 0x2e8   : > { %v2197_v5 = vmax.f32 %v2196_v53, %v2166_v61  ;;  %v2245_v6 = vmax.f32 %v2244_v54, %v2168_v62  ;;  %v988_v4 = vsub.s32 4, %v3525_v34 }
 0x2e9   : > { %v2167_v7 = vmax.f32 %v1487_v63, 0.0  ;;  %v2169_v15 = vmax.f32 %v1648_v2, 0.0  ;;  %v1489_v8 = vpop.f32.mrf.mxu0  ;;  %v1650_v16 = vpop.f32.mrf.mxu1 }
 0x2ea   : > { %v2413_v9 = vrot.slane %v2197_v5, 4  ;;  %v2425_v11 = vrot.slane %v2245_v6, 4  ;;  %v1000_v8 = vsub.s32 7, %v3525_v34 }
 0x2eb   : > { %v2221_v12 = vmax.f32 %v2220_v58, %v2167_v7  ;;  %v2269_v13 = vmax.f32 %v2268_v60, %v2169_v15  ;;  %v3658_v14 = vpop.f32.mrf.mxu0  ;;  %v3660_v22 = vpop.f32.mrf.mxu1  ;;  %v992_v15 = vsub.s32 5, %v3525_v34 }
 0x2ec   : > { %v2414_v59 = vmax.f32 %v2197_v5, %v2413_v9  ;;  %v2426_v19 = vmax.f32 %v2245_v6, %v2425_v11  ;;  %v996_v5 = vsub.s32 6, %v3525_v34  ;;  %v3694_v11 = vrot.slane %v3536_v46, %v988_v4 }
 0x2ed   : > { %v2419_v21 = vrot.slane %v2221_v12, 4  ;;  %v2431_v20 = vrot.slane %v2269_v13, 4  ;;  %v3662_v1 = vpop.f32.mrf.mxu0  ;;  %v3664_v10 = vpop.f32.mrf.mxu1 }
 0x2ee   : > { %v2415_v17 = vrot.slane %v2414_v59, 2  ;;  %v2427_v18 = vrot.slane %v2426_v19, 2  ;;  %v1687_v49 = vadd.f32 %v3658_v14, %v3694_v11 }
 0x2ef   : > { %v2420_v24 = vmax.f32 %v2221_v12, %v2419_v21  ;;  %v2432_v25 = vmax.f32 %v2269_v13, %v2431_v20  ;;  %v1690_v26 = vpop.f32.mrf.mxu0  ;;  %v1851_v27 = vpop.f32.mrf.mxu1  ;;  %v3697_v12 = vrot.slane %v3536_v46, %v996_v5  ;;  %v3707_v21 = vrot.slane %v3536_v46, %v1000_v8 }
 0x2f0   : > { %v2416_v0 = vmax.f32 %v2414_v59, %v2415_v17  ;;  %v2428_v28 = vmax.f32 %v2426_v19, %v2427_v18  ;;  %v3704_v19 = vrot.slane %v3536_v46, %v992_v15  ;;  %v1691_v17 = vadd.f32 %v1690_v26, %v3694_v11 }
 0x2f1   : > { %v2421_v29 = vrot.slane %v2420_v24, 2  ;;  %v2433_v30 = vrot.slane %v2432_v25, 2  ;;  %v1692_v31 = vpop.f32.mrf.mxu0  ;;  %v1853_v32 = vpop.f32.mrf.mxu1  ;;  %v1852_v18 = vadd.f32 %v1851_v27, %v3697_v12  ;;  %v1848_v23 = vadd.f32 %v3660_v22, %v3697_v12 }
 0x2f2   : > { %v2417_v56 = vrot.slane %v2416_v0, 1  ;;  %v2429_v35 = vrot.slane %v2428_v28, 1  ;;  %v1689_v46 = vadd.f32 %v3662_v1, %v3704_v19  ;;  %v1693_v26 = vadd.f32 %v1692_v31, %v3704_v19 }
 0x2f3   : > { %v2422_v36 = vmax.f32 %v2420_v24, %v2421_v29  ;;  %v2434_v37 = vmax.f32 %v2432_v25, %v2433_v30  ;;  %v1696_v38 = vpop.f32.mrf.mxu0  ;;  %v1857_v39 = vpop.f32.mrf.mxu1  ;;  %v1854_v27 = vadd.f32 %v1853_v32, %v3707_v21  ;;  %v1986_v30 = vmax.f32 %v1691_v17, 0.0 }
 0x2f4   : > { %v2418_v45 = vmax.f32 %v2416_v0, %v2417_v56  ;;  %v2430_v47 = vmax.f32 %v2428_v28, %v2429_v35  ;;  %v1850_v0 = vadd.f32 %v3664_v10, %v3707_v21  ;;  %v1697_v28 = vadd.f32 %v1696_v38, %v3694_v11 }
 0x2f5   : > { %v2423_v40 = vrot.slane %v2422_v36, 1  ;;  %v2435_v41 = vrot.slane %v2434_v37, 1  ;;  %v1698_v42 = vpop.f32.mrf.mxu0  ;;  %v1859_v43 = vpop.f32.mrf.mxu1  ;;  %v1858_v14 = vadd.f32 %v1857_v39, %v3697_v12  ;;  %v1988_v33 = vmax.f32 %v1852_v18, 0.0 }
 0x2f6   : > { %v1978_v56 = vmax.f32 %v1687_v49, 0.0  ;;  %v1980_v35 = vmax.f32 %v1848_v23, 0.0  ;;  %v1699_v1 = vadd.f32 %v1698_v42, %v3704_v19  ;;  %v1860_v10 = vadd.f32 %v1859_v43, %v3707_v21 }
 0x2f7   : > { %v2424_v48 = vmax.f32 %v2422_v36, %v2423_v40  ;;  %v2436_v50 = vmax.f32 %v2434_v37, %v2435_v41  ;;  %v1700_v51 = vpop.f32.mrf.mxu0  ;;  %v1861_v52 = vpop.f32.mrf.mxu1  ;;  %v1979_v32 = vmax.f32 %v1689_v46, 0.0  ;;  %v1981_v37 = vmax.f32 %v1850_v0, 0.0 }
 0x2f8   : > { %v1987_v38 = vmax.f32 %v1693_v26, 0.0  ;;  %v1989_v39 = vmax.f32 %v1854_v27, 0.0  ;;  %v1994_v40 = vmax.f32 %v1697_v28, 0.0  ;;  %v1996_v41 = vmax.f32 %v1858_v14, 0.0 }
 0x2f9   : > { %v2469_v53 = vcombine.low %v2418_v45, %v2424_v48  ;;  %v2470_v54 = vcombine.low %v2430_v47, %v2436_v50  ;;  %v1702_v55 = vpop.f32.mrf.mxu0  ;;  %v1863_v57 = vpop.f32.mrf.mxu1  ;;  %v1701_v45 = vadd.f32 %v1700_v51, %v3694_v11  ;;  %v1862_v47 = vadd.f32 %v1861_v52, %v3697_v12 }
 0x2fa   : > { %v2270_v42 = vmax.f32 %v1978_v56, %v1986_v30  ;;  %v2318_v43 = vmax.f32 %v1980_v35, %v1988_v33  ;;  %v1995_v4 = vmax.f32 %v1699_v1, 0.0  ;;  %v1997_v5 = vmax.f32 %v1860_v10, 0.0 }
 0x2fb   : > { %v3670_v58 = vrot.slane %v2469_v53, %v3667_v44  ;;  %v3673_v60 = vrot.slane %v2470_v54, %v3667_v44  ;;  %v1706_v61 = vpop.f32.mrf.mxu0  ;;  %v1867_v62 = vpop.f32.mrf.mxu1  ;;  %v1703_v53 = vadd.f32 %v1702_v55, %v3704_v19  ;;  %v1864_v54 = vadd.f32 %v1863_v57, %v3707_v21 }
 0x2fc   : > { %v1707_v15 = vadd.f32 %v1706_v61, %v3694_v11  ;;  %v1868_v8 = vadd.f32 %v1867_v62, %v3697_v12  ;;  %v2294_v52 = vmax.f32 %v1979_v32, %v1987_v38  ;;  %v2342_v18 = vmax.f32 %v1981_v37, %v1989_v39 }
 0x2fd   : > { %v3675_v63 = vpop.f32.mrf.mxu0  ;;  %v3677_v2 = vpop.f32.mrf.mxu1  ;;  %v2501_v3 = vcombine.low %v3670_v58, %v3673_v60  ;;  %v2271_v23 = vmax.f32 %v2270_v42, %v1994_v40  ;;  %v2319_v57 = vmax.f32 %v2318_v43, %v1996_v41  ;;  %v2002_v46 = vmax.f32 %v1701_v45, 0.0 }
 0x2fe   : > { %v1709_v49 = vadd.f32 %v3675_v63, %v3704_v19  ;;  %v1870_v55 = vadd.f32 %v3677_v2, %v3707_v21  ;;  %v2004_v0 = vmax.f32 %v1862_v47, 0.0  ;;  %v2003_v62 = vmax.f32 %v1703_v53, 0.0 }
 0x2ff   : > { %v3683_v6 = vpop.f32.mrf.mxu0  ;;  %v3685_v7 = vpop.f32.mrf.mxu1  ;;  %v2005_v27 = vmax.f32 %v1864_v54, 0.0  ;;  %v2295_v63 = vmax.f32 %v2294_v52, %v1995_v4  ;;  %v2343_v30 = vmax.f32 %v2342_v18, %v1997_v5  ;;  %v2010_v33 = vmax.f32 %v1707_v15, 0.0 }
 0x300   : > { %v1711_v28 = vadd.f32 %v3683_v6, %v3694_v11  ;;  %v1872_v14 = vadd.f32 %v3685_v7, %v3697_v12  ;;  %v2012_v2 = vmax.f32 %v1868_v8, 0.0  ;;  %v2011_v1 = vmax.f32 %v1709_v49, 0.0 }
 0x301   : > { %v3689_v16 = vpop.f32.mrf.mxu0  ;;  %v3691_v9 = vpop.f32.mrf.mxu1  ;;  %v2013_v10 = vmax.f32 %v1870_v55, 0.0  ;;  %v2272_v6 = vmax.f32 %v2271_v23, %v2002_v46  ;;  %v2320_v38 = vmax.f32 %v2319_v57, %v2004_v0  ;;  %v2296_v45 = vmax.f32 %v2295_v63, %v2003_v62 }
 0x302   : > { %v1713_v32 = vadd.f32 %v3689_v16, %v3704_v19  ;;  %v1874_v37 = vadd.f32 %v3691_v9, %v3707_v21  ;;  %v2344_v47 = vmax.f32 %v2343_v30, %v2005_v27  ;;  %v2018_v42 = vmax.f32 %v1711_v28, 0.0 }
 0x303   : > { %v3699_v13 = vpop.f32.mrf.mxu0  ;;  %v3701_v59 = vpop.f32.mrf.mxu1  ;;  %v2020_v43 = vmax.f32 %v1872_v14, 0.0  ;;  %v2273_v16 = vmax.f32 %v2272_v6, %v2010_v33  ;;  %v2321_v53 = vmax.f32 %v2320_v38, %v2012_v2 }
 0x304   : > { %v1717_v7 = vadd.f32 %v3699_v13, %v3694_v11  ;;  %v1878_v39 = vadd.f32 %v3701_v59, %v3697_v12  ;;  %v2297_v59 = vmax.f32 %v2296_v45, %v2011_v1  ;;  %v2345_v5 = vmax.f32 %v2344_v47, %v2013_v10 }
 0x305   : > { %v3709_v34 = vpop.f32.mrf.mxu0  ;;  %v3711_v20 = vpop.f32.mrf.mxu1  ;;  %v2019_v15 = vmax.f32 %v1713_v32, 0.0  ;;  %v2021_v8 = vmax.f32 %v1874_v37, 0.0  ;;  %v2322_v57 = vmax.f32 %v2321_v53, %v2020_v43 }
 0x306   : > { %v1719_v9 = vadd.f32 %v3709_v34, %v3704_v19  ;;  %v1880_v54 = vadd.f32 %v3711_v20, %v3707_v21  ;;  %v2026_v52 = vmax.f32 %v1717_v7, 0.0  ;;  %v2028_v18 = vmax.f32 %v1878_v39, 0.0 }
 0x307   : > { %v3719_v24 = vpop.f32.mrf.mxu0  ;;  %v3721_v25 = vpop.f32.mrf.mxu1  ;;  %v2274_v20 = vmax.f32 %v2273_v16, %v2018_v42  ;;  %v2298_v63 = vmax.f32 %v2297_v59, %v2019_v15  ;;  %v2346_v30 = vmax.f32 %v2345_v5, %v2021_v8 }
 0x308   : > { %v1721_v49 = vadd.f32 %v3719_v24, %v3694_v11  ;;  %v1882_v55 = vadd.f32 %v3721_v25, %v3697_v12  ;;  %v2027_v62 = vmax.f32 %v1719_v9, 0.0  ;;  %v2029_v27 = vmax.f32 %v1880_v54, 0.0 }
 0x309   : > { %v3731_v29 = vpop.f32.mrf.mxu0  ;;  %v3733_v22 = vpop.f32.mrf.mxu1  ;;  %v2275_v2 = vmax.f32 %v2274_v20, %v2026_v52 }
 0x30a   : > { %v1723_v46 = vadd.f32 %v3731_v29, %v3704_v19  ;;  %v1884_v0 = vadd.f32 %v3733_v22, %v3707_v21  ;;  %v2323_v22 = vmax.f32 %v2322_v57, %v2028_v18  ;;  %v2034_v1 = vmax.f32 %v1721_v49, 0.0 }
 0x30b   : > { %v3737_v36 = vpop.f32.mrf.mxu0  ;;  %v3739_v31 = vpop.f32.mrf.mxu1  ;;  %v2036_v10 = vmax.f32 %v1882_v55, 0.0  ;;  %v2299_v7 = vmax.f32 %v2298_v63, %v2027_v62  ;;  %v2347_v39 = vmax.f32 %v2346_v30, %v2029_v27 }
 0x30c   : > { %v1727_v24 = vadd.f32 %v3737_v36, %v3694_v11  ;;  %v1888_v25 = vadd.f32 %v3739_v31, %v3697_v12  ;;  %v2035_v36 = vmax.f32 %v1723_v46, 0.0  ;;  %v2037_v6 = vmax.f32 %v1884_v0, 0.0 }
 0x30d   : > { %v3743_v48 = vpop.f32.mrf.mxu0  ;;  %v3745_v50 = vpop.f32.mrf.mxu1  ;;  %v2276_v9 = vmax.f32 %v2275_v2, %v2034_v1  ;;  %v2324_v54 = vmax.f32 %v2323_v22, %v2036_v10 }
 0x30e   : > { %v1729_v33 = vadd.f32 %v3743_v48, %v3704_v19  ;;  %v1890_v29 = vadd.f32 %v3745_v50, %v3707_v21  ;;  %v2042_v48 = vmax.f32 %v1727_v24, 0.0  ;;  %v2044_v45 = vmax.f32 %v1888_v25, 0.0 }
 0x30f   : > { %v3751_v17 = vpop.f32.mrf.mxu0  ;;  %v3753_v51 = vpop.f32.mrf.mxu1  ;;  %v2300_v15 = vmax.f32 %v2299_v7, %v2035_v36  ;;  %v2348_v8 = vmax.f32 %v2347_v39, %v2037_v6 }
 0x310   : > { %v1731_v31 = vadd.f32 %v3751_v17, %v3694_v11  ;;  %v1892_v38 = vadd.f32 %v3753_v51, %v3697_v12  ;;  %v2043_v42 = vmax.f32 %v1729_v33, 0.0  ;;  %v2045_v43 = vmax.f32 %v1890_v29, 0.0 }
 0x311   : > { %v3759_v26 = vpop.f32.mrf.mxu0  ;;  %v3761_v61 = vpop.f32.mrf.mxu1  ;;  %v2277_v49 = vmax.f32 %v2276_v9, %v2042_v48  ;;  %v2325_v55 = vmax.f32 %v2324_v54, %v2044_v45 }
 0x312   : > { %v1733_v16 = vadd.f32 %v3759_v26, %v3704_v19  ;;  %v1894_v53 = vadd.f32 %v3761_v61, %v3707_v21  ;;  %v2050_v52 = vmax.f32 %v1731_v31, 0.0  ;;  %v2052_v18 = vmax.f32 %v1892_v38, 0.0 }
 0x313   : > { %v3767_v56 = vpop.f32.mrf.mxu0  ;;  %v3769_v35 = vpop.f32.mrf.mxu1  ;;  %v2349_v46 = vmax.f32 %v2348_v8, %v2045_v43 }
 0x314   : > { %v1737_v17 = vadd.f32 %v3767_v56, %v3694_v11  ;;  %v1898_v51 = vadd.f32 %v3769_v35, %v3697_v12  ;;  %v2301_v56 = vmax.f32 %v2300_v15, %v2043_v42  ;;  %v2051_v0 = vmax.f32 %v1733_v16, 0.0 }
 0x315   : > { %v3779_v40 = vpop.f32.mrf.mxu0  ;;  %v3781_v41 = vpop.f32.mrf.mxu1  ;;  %v2053_v35 = vmax.f32 %v1894_v53, 0.0  ;;  %v2326_v33 = vmax.f32 %v2325_v55, %v2052_v18 }
 0x316   : > { %v1739_v26 = vadd.f32 %v3779_v40, %v3704_v19  ;;  %v1900_v61 = vadd.f32 %v3781_v41, %v3707_v21  ;;  %v2058_v62 = vmax.f32 %v1737_v17, 0.0  ;;  %v2060_v27 = vmax.f32 %v1898_v51, 0.0 }
 0x317   : > { %v3787_v13 = vpop.f32.mrf.mxu0  ;;  %v3789_v4 = vpop.f32.mrf.mxu1  ;;  %v2278_v40 = vmax.f32 %v2277_v49, %v2050_v52  ;;  %v2302_v6 = vmax.f32 %v2301_v56, %v2051_v0 }
 0x318   : > { %v1741_v24 = vadd.f32 %v3787_v13, %v3694_v11  ;;  %v1902_v25 = vadd.f32 %v3789_v4, %v3697_v12  ;;  %v2059_v2 = vmax.f32 %v1739_v26, 0.0  ;;  %v2061_v22 = vmax.f32 %v1900_v61, 0.0 }
 0x319   : > { %v3795_v34 = vpop.f32.mrf.mxu0  ;;  %v3797_v23 = vpop.f32.mrf.mxu1  ;;  %v2350_v4 = vmax.f32 %v2349_v46, %v2053_v35  ;;  %v2279_v7 = vmax.f32 %v2278_v40, %v2058_v62  ;;  %v2327_v39 = vmax.f32 %v2326_v33, %v2060_v27 }
 0x31a   : > { %v1743_v41 = vadd.f32 %v3795_v34, %v3704_v19  ;;  %v1904_v29 = vadd.f32 %v3797_v23, %v3707_v21  ;;  %v2066_v34 = vmax.f32 %v1741_v24, 0.0  ;;  %v2068_v48 = vmax.f32 %v1902_v25, 0.0 }
 0x31b   : > { %v1746_v28 = vpop.f32.mrf.mxu0  ;;  %v1907_v14 = vpop.f32.mrf.mxu1  ;;  %v2303_v16 = vmax.f32 %v2302_v6, %v2059_v2  ;;  %v2351_v53 = vmax.f32 %v2350_v4, %v2061_v22 }
 0x31c   : > { %v1747_v1 = vadd.f32 %v1746_v28, %v3694_v11  ;;  %v1908_v10 = vadd.f32 %v1907_v14, %v3697_v12  ;;  %v2067_v42 = vmax.f32 %v1743_v41, 0.0  ;;  %v2069_v43 = vmax.f32 %v1904_v29, 0.0 }
 0x31d   : > { %v1748_v32 = vpop.f32.mrf.mxu0  ;;  %v1909_v37 = vpop.f32.mrf.mxu1  ;;  %v2280_v52 = vmax.f32 %v2279_v7, %v2066_v34  ;;  %v2328_v18 = vmax.f32 %v2327_v39, %v2068_v48 }
 0x31e   : > { %v1749_v31 = vadd.f32 %v1748_v32, %v3704_v19  ;;  %v1910_v38 = vadd.f32 %v1909_v37, %v3707_v21  ;;  %v2074_v9 = vmax.f32 %v1747_v1, 0.0  ;;  %v2076_v54 = vmax.f32 %v1908_v10, 0.0 }
 0x31f   : > { %v1750_v47 = vpop.f32.mrf.mxu0  ;;  %v1911_v50 = vpop.f32.mrf.mxu1  ;;  %v2304_v26 = vmax.f32 %v2303_v16, %v2067_v42  ;;  %v2352_v61 = vmax.f32 %v2351_v53, %v2069_v43 }
 0x320   : > { %v1751_v28 = vadd.f32 %v1750_v47, %v3694_v11  ;;  %v1912_v14 = vadd.f32 %v1911_v50, %v3697_v12  ;;  %v2075_v51 = vmax.f32 %v1749_v31, 0.0  ;;  %v2077_v37 = vmax.f32 %v1910_v38, 0.0 }
 0x321   : > { %v1752_v59 = vpop.f32.mrf.mxu0  ;;  %v1913_v5 = vpop.f32.mrf.mxu1  ;;  %v2281_v0 = vmax.f32 %v2280_v52, %v2074_v9  ;;  %v2329_v35 = vmax.f32 %v2328_v18, %v2076_v54 }
 0x322   : > { %v1753_v15 = vadd.f32 %v1752_v59, %v3704_v19  ;;  %v1914_v8 = vadd.f32 %v1913_v5, %v3707_v21  ;;  %v2082_v56 = vmax.f32 %v1751_v28, 0.0  ;;  %v2084_v46 = vmax.f32 %v1912_v14, 0.0 }
 0x323   : > { %v1756_v20 = vpop.f32.mrf.mxu0  ;;  %v1917_v57 = vpop.f32.mrf.mxu1  ;;  %v2305_v24 = vmax.f32 %v2304_v26, %v2075_v51  ;;  %v2353_v25 = vmax.f32 %v2352_v61, %v2077_v37 }
 0x324   : > { %v1757_v49 = vadd.f32 %v1756_v20, %v3694_v11  ;;  %v1918_v47 = vadd.f32 %v1917_v57, %v3697_v12  ;;  %v2083_v40 = vmax.f32 %v1753_v15, 0.0  ;;  %v2085_v20 = vmax.f32 %v1914_v8, 0.0 }
 0x325   : > { %v1758_v63 = vpop.f32.mrf.mxu0  ;;  %v1919_v30 = vpop.f32.mrf.mxu1  ;;  %v2282_v1 = vmax.f32 %v2281_v0, %v2082_v56  ;;  %v2330_v10 = vmax.f32 %v2329_v35, %v2084_v46 }
 0x326   : > { %v1759_v62 = vadd.f32 %v1758_v63, %v3704_v19  ;;  %v1920_v59 = vadd.f32 %v1919_v30, %v3707_v21  ;;  %v2090_v33 = vmax.f32 %v1757_v49, 0.0  ;;  %v2092_v57 = vmax.f32 %v1918_v47, 0.0 }
 0x327   : > { %v1760_v13 = vpop.f32.mrf.mxu0  ;;  %v1921_v36 = vpop.f32.mrf.mxu1  ;;  %v2306_v34 = vmax.f32 %v2305_v24, %v2083_v40 }
 0x328   : > { %v1761_v41 = vadd.f32 %v1760_v13, %v3694_v11  ;;  %v1922_v29 = vadd.f32 %v1921_v36, %v3697_v12  ;;  %v2091_v6 = vmax.f32 %v1759_v62, 0.0  ;;  %v2093_v4 = vmax.f32 %v1920_v59, 0.0 }
 0x329   : > { %v1762_v45 = vpop.f32.mrf.mxu0  ;;  %v1923_v23 = vpop.f32.mrf.mxu1  ;;  %v2354_v13 = vmax.f32 %v2353_v25, %v2085_v20  ;;  %v2283_v42 = vmax.f32 %v2282_v1, %v2090_v33  ;;  %v2331_v43 = vmax.f32 %v2330_v10, %v2092_v57 }
 0x32a   : > { %v1763_v63 = vadd.f32 %v1762_v45, %v3704_v19  ;;  %v1924_v30 = vadd.f32 %v1923_v23, %v3707_v21  ;;  %v2098_v28 = vmax.f32 %v1761_v41, 0.0  ;;  %v2100_v45 = vmax.f32 %v1922_v29, 0.0 }
 0x32b   : > { %v1766_v17 = vpop.f32.mrf.mxu0  ;;  %v1927_v32 = vpop.f32.mrf.mxu1 }
 0x32c   : > { %v1767_v31 = vadd.f32 %v1766_v17, %v3694_v11  ;;  %v1928_v38 = vadd.f32 %v1927_v32, %v3697_v12  ;;  %v2099_v16 = vmax.f32 %v1763_v63, 0.0  ;;  %v2101_v53 = vmax.f32 %v1924_v30, 0.0 }
 0x32d   : > { %v1768_v55 = vpop.f32.mrf.mxu0  ;;  %v1929_v50 = vpop.f32.mrf.mxu1  ;;  %v2307_v17 = vmax.f32 %v2306_v34, %v2091_v6  ;;  %v2355_v32 = vmax.f32 %v2354_v13, %v2093_v4 }
 0x32e   : > { %v1769_v36 = vadd.f32 %v1768_v55, %v3704_v19  ;;  %v1930_v48 = vadd.f32 %v1929_v50, %v3707_v21  ;;  %v2106_v51 = vmax.f32 %v1767_v31, 0.0  ;;  %v2108_v37 = vmax.f32 %v1928_v38, 0.0 }
 0x32f   : > { %v1770_v27 = vpop.f32.mrf.mxu0  ;;  %v1931_v5 = vpop.f32.mrf.mxu1  ;;  %v2284_v55 = vmax.f32 %v2283_v42, %v2098_v28  ;;  %v2332_v50 = vmax.f32 %v2331_v43, %v2100_v45  ;;  %v2308_v0 = vmax.f32 %v2307_v17, %v2099_v16  ;;  %v2356_v35 = vmax.f32 %v2355_v32, %v2101_v53 }
 0x330   : > { %v1771_v9 = vadd.f32 %v1770_v27, %v3694_v11  ;;  %v1932_v54 = vadd.f32 %v1931_v5, %v3697_v12  ;;  %v2107_v52 = vmax.f32 %v1769_v36, 0.0  ;;  %v2109_v18 = vmax.f32 %v1930_v48, 0.0 }
 0x331   : > { %v1772_v2 = vpop.f32.mrf.mxu0  ;;  %v1933_v22 = vpop.f32.mrf.mxu1  ;;  %v2285_v27 = vmax.f32 %v2284_v55, %v2106_v51  ;;  %v2333_v5 = vmax.f32 %v2332_v50, %v2108_v37 }
 0x332   : > { %v1773_v49 = vadd.f32 %v1772_v2, %v3704_v19  ;;  %v1934_v47 = vadd.f32 %v1933_v22, %v3707_v21  ;;  %v2114_v62 = vmax.f32 %v1771_v9, 0.0  ;;  %v2116_v59 = vmax.f32 %v1932_v54, 0.0 }
 0x333   : > { %v1776_v7 = vpop.f32.mrf.mxu0  ;;  %v1937_v39 = vpop.f32.mrf.mxu1  ;;  %v2309_v33 = vmax.f32 %v2308_v0, %v2107_v52  ;;  %v2357_v57 = vmax.f32 %v2356_v35, %v2109_v18 }
 0x334   : > { %v1777_v26 = vadd.f32 %v1776_v7, %v3694_v11  ;;  %v1938_v61 = vadd.f32 %v1937_v39, %v3697_v12  ;;  %v2115_v41 = vmax.f32 %v1773_v49, 0.0  ;;  %v2117_v29 = vmax.f32 %v1934_v47, 0.0 }
 0x335   : > { %v1778_v14 = vpop.f32.mrf.mxu0  ;;  %v1939_v23 = vpop.f32.mrf.mxu1  ;;  %v2286_v6 = vmax.f32 %v2285_v27, %v2114_v62  ;;  %v2334_v4 = vmax.f32 %v2333_v5, %v2116_v59 }
 0x336   : > { %v1779_v24 = vadd.f32 %v1778_v14, %v3704_v19  ;;  %v1940_v25 = vadd.f32 %v1939_v23, %v3707_v21  ;;  %v2122_v2 = vmax.f32 %v1777_v26, 0.0  ;;  %v2124_v22 = vmax.f32 %v1938_v61, 0.0 }
 0x337   : > { %v1780_v15 = vpop.f32.mrf.mxu0  ;;  %v1941_v8 = vpop.f32.mrf.mxu1  ;;  %v2310_v42 = vmax.f32 %v2309_v33, %v2115_v41  ;;  %v2358_v43 = vmax.f32 %v2357_v57, %v2117_v29 }
 0x338   : > { %v1781_v1 = vadd.f32 %v1780_v15, %v3694_v11  ;;  %v1942_v10 = vadd.f32 %v1941_v8, %v3697_v12  ;;  %v2123_v7 = vmax.f32 %v1779_v24, 0.0  ;;  %v2125_v39 = vmax.f32 %v1940_v25, 0.0 }
 0x339   : > { %v1782_v56 = vpop.f32.mrf.mxu0  ;;  %v1943_v46 = vpop.f32.mrf.mxu1  ;;  %v2287_v14 = vmax.f32 %v2286_v6, %v2122_v2  ;;  %v2335_v23 = vmax.f32 %v2334_v4, %v2124_v22 }
 0x33a   : > { %v1783_v31 = vadd.f32 %v1782_v56, %v3704_v19  ;;  %v1944_v38 = vadd.f32 %v1943_v46, %v3707_v21  ;;  %v2130_v16 = vmax.f32 %v1781_v1, 0.0  ;;  %v2132_v53 = vmax.f32 %v1942_v10, 0.0 }
 0x33b   : > { %v1786_v40 = vpop.f32.mrf.mxu0  ;;  %v1947_v20 = vpop.f32.mrf.mxu1  ;;  %v2311_v15 = vmax.f32 %v2310_v42, %v2123_v7  ;;  %v2359_v8 = vmax.f32 %v2358_v43, %v2125_v39 }
 0x33c   : > { %v1787_v34 = vadd.f32 %v1786_v40, %v3694_v11  ;;  %v1948_v13 = vadd.f32 %v1947_v20, %v3697_v12  ;;  %v2131_v17 = vmax.f32 %v1783_v31, 0.0  ;;  %v2133_v32 = vmax.f32 %v1944_v38, 0.0 }
 0x33d   : > { %v1788_v63 = vpop.f32.mrf.mxu0  ;;  %v1949_v30 = vpop.f32.mrf.mxu1  ;;  %v2288_v56 = vmax.f32 %v2287_v14, %v2130_v16  ;;  %v2336_v46 = vmax.f32 %v2335_v23, %v2132_v53 }
 0x33e   : > { %v1789_v28 = vadd.f32 %v1788_v63, %v3704_v19  ;;  %v1950_v45 = vadd.f32 %v1949_v30, %v3707_v21  ;;  %v2138_v52 = vmax.f32 %v1787_v34, 0.0  ;;  %v2140_v18 = vmax.f32 %v1948_v13, 0.0 }
 0x33f   : > { %v1790_v36 = vpop.f32.mrf.mxu0  ;;  %v1951_v48 = vpop.f32.mrf.mxu1  ;;  %v2312_v27 = vmax.f32 %v2311_v15, %v2131_v17  ;;  %v2360_v5 = vmax.f32 %v2359_v8, %v2133_v32 }
 0x340   : > { %v1791_v51 = vadd.f32 %v1790_v36, %v3694_v11  ;;  %v1952_v37 = vadd.f32 %v1951_v48, %v3697_v12  ;;  %v2139_v55 = vmax.f32 %v1789_v28, 0.0  ;;  %v2141_v50 = vmax.f32 %v1950_v45, 0.0 }
 0x341   : > { %v1792_v9 = vpop.f32.mrf.mxu0  ;;  %v1953_v54 = vpop.f32.mrf.mxu1  ;;  %v2289_v40 = vmax.f32 %v2288_v56, %v2138_v52  ;;  %v2337_v20 = vmax.f32 %v2336_v46, %v2140_v18 }
 0x342   : > { %v1793_v0 = vadd.f32 %v1792_v9, %v3704_v19  ;;  %v1954_v35 = vadd.f32 %v1953_v54, %v3707_v21  ;;  %v2146_v24 = vmax.f32 %v1791_v51, 0.0  ;;  %v2148_v25 = vmax.f32 %v1952_v37, 0.0 }
 0x343   : > { %v1796_v49 = vpop.f32.mrf.mxu0  ;;  %v1957_v47 = vpop.f32.mrf.mxu1  ;;  %v2313_v2 = vmax.f32 %v2312_v27, %v2139_v55  ;;  %v2361_v22 = vmax.f32 %v2360_v5, %v2141_v50 }
 0x344   : > { %v1797_v26 = vadd.f32 %v1796_v49, %v3694_v11  ;;  %v1958_v61 = vadd.f32 %v1957_v47, %v3697_v12  ;;  %v2147_v63 = vmax.f32 %v1793_v0, 0.0  ;;  %v2149_v30 = vmax.f32 %v1954_v35, 0.0 }
 0x345   : > { %v1798_v62 = vpop.f32.mrf.mxu0  ;;  %v1959_v59 = vpop.f32.mrf.mxu1  ;;  %v2290_v7 = vmax.f32 %v2289_v40, %v2146_v24  ;;  %v2338_v39 = vmax.f32 %v2337_v20, %v2148_v25 }
 0x346   : > { %v1799_v33 = vadd.f32 %v1798_v62, %v3704_v19  ;;  %v1960_v57 = vadd.f32 %v1959_v59, %v3707_v21  ;;  %v2154_v1 = vmax.f32 %v1797_v26, 0.0  ;;  %v2156_v10 = vmax.f32 %v1958_v61, 0.0 }
 0x347   : > { %v1800_v41 = vpop.f32.mrf.mxu0  ;;  %v1961_v29 = vpop.f32.mrf.mxu1  ;;  %v2314_v9 = vmax.f32 %v2313_v2, %v2147_v63  ;;  %v2362_v54 = vmax.f32 %v2361_v22, %v2149_v30 }
 0x348   : > { %v1801_v6 = vadd.f32 %v1800_v41, %v3694_v11  ;;  %v1962_v4 = vadd.f32 %v1961_v29, %v3697_v12  ;;  %v2155_v36 = vmax.f32 %v1799_v33, 0.0  ;;  %v2157_v48 = vmax.f32 %v1960_v57, 0.0 }
 0x349   : > { %v1802_v31 = vpop.f32.mrf.mxu0  ;;  %v1963_v38 = vpop.f32.mrf.mxu1  ;;  %v2291_v14 = vmax.f32 %v2290_v7, %v2154_v1  ;;  %v2339_v23 = vmax.f32 %v2338_v39, %v2156_v10 }
 0x34a   : > { %v1803_v34 = vadd.f32 %v1802_v31, %v3704_v19  ;;  %v1964_v13 = vadd.f32 %v1963_v38, %v3707_v21  ;;  %v2162_v42 = vmax.f32 %v1801_v6, 0.0  ;;  %v2164_v43 = vmax.f32 %v1962_v4, 0.0 }
 0x34b   : > { %v1806_v28 = vpop.f32.mrf.mxu0  ;;  %v1967_v45 = vpop.f32.mrf.mxu1  ;;  %v2315_v49 = vmax.f32 %v2314_v9, %v2155_v36  ;;  %v2363_v47 = vmax.f32 %v2362_v54, %v2157_v48 }
 0x34c   : > { %v1807_v16 = vadd.f32 %v1806_v28, %v3694_v11  ;;  %v1968_v53 = vadd.f32 %v1967_v45, %v3697_v12  ;;  %v2163_v17 = vmax.f32 %v1803_v34, 0.0  ;;  %v2165_v32 = vmax.f32 %v1964_v13, 0.0 }
 0x34d   : > { %v1808_v51 = vpop.f32.mrf.mxu0  ;;  %v1969_v37 = vpop.f32.mrf.mxu1  ;;  %v2292_v15 = vmax.f32 %v2291_v14, %v2162_v42  ;;  %v2340_v8 = vmax.f32 %v2339_v23, %v2164_v43  ;;  %v2509_v45 = vrot.slane %v2501_v3, %v3667_v44 }
 0x34e   : > { %v2170_v52 = vmax.f32 %v1807_v16, 0.0  ;;  %v2172_v18 = vmax.f32 %v1968_v53, 0.0  ;;  %v1809_v55 = vadd.f32 %v1808_v51, %v3704_v19  ;;  %v1970_v50 = vadd.f32 %v1969_v37, %v3707_v21 }
 0x34f   : > { %v1810_v26 = vpop.f32.mrf.mxu0  ;;  %v1971_v11 = vpop.f32.mrf.mxu1  ;;  %v2316_v56 = vmax.f32 %v2315_v49, %v2163_v17  ;;  %v2364_v46 = vmax.f32 %v2363_v47, %v2165_v32 }
 0x350   : > { %v2293_v61 = vmax.f32 %v2292_v15, %v2170_v52  ;;  %v2341_v12 = vmax.f32 %v2340_v8, %v2172_v18  ;;  %v2171_v0 = vmax.f32 %v1809_v55, 0.0  ;;  %v2173_v35 = vmax.f32 %v1970_v50, 0.0 }
 0x351   : > { %v1811_v62 = vpop.f32.mrf.mxu0  ;;  %v1972_v59 = vpop.f32.mrf.mxu1 }
 0x352   : > { %v2437_v27 = vrot.slane %v2293_v61, 4  ;;  %v2449_v5 = vrot.slane %v2341_v12, 4  ;;  %v2317_v24 = vmax.f32 %v2316_v56, %v2171_v0  ;;  %v2365_v25 = vmax.f32 %v2364_v46, %v2173_v35 }
 0x354   : > { %v2438_v40 = vmax.f32 %v2293_v61, %v2437_v27  ;;  %v2450_v20 = vmax.f32 %v2341_v12, %v2449_v5  ;;  %v2443_v33 = vrot.slane %v2317_v24, 4  ;;  %v2455_v19 = vrot.slane %v2365_v25, 4 }
 0x356   : > { %v2439_v21 = vrot.slane %v2438_v40, 2  ;;  %v2451_v57 = vrot.slane %v2450_v20, 2  ;;  %v2444_v41 = vmax.f32 %v2317_v24, %v2443_v33  ;;  %v2456_v29 = vmax.f32 %v2365_v25, %v2455_v19 }
 0x358   : > { %v2440_v2 = vmax.f32 %v2438_v40, %v2439_v21  ;;  %v2452_v22 = vmax.f32 %v2450_v20, %v2451_v57  ;;  %v2445_v1 = vrot.slane %v2444_v41, 2  ;;  %v2457_v10 = vrot.slane %v2456_v29, 2 }
 0x35a   : > { %v2441_v63 = vrot.slane %v2440_v2, 1  ;;  %v2453_v30 = vrot.slane %v2452_v22, 1  ;;  %v2446_v6 = vmax.f32 %v2444_v41, %v2445_v1  ;;  %v2458_v4 = vmax.f32 %v2456_v29, %v2457_v10 }
 0x35c   : > { %v2447_v31 = vrot.slane %v2446_v6, 1  ;;  %v2459_v38 = vrot.slane %v2458_v4, 1  ;;  %v2442_v7 = vmax.f32 %v2440_v2, %v2441_v63  ;;  %v2454_v39 = vmax.f32 %v2452_v22, %v2453_v30 }
 0x35e   : > { %v2448_v34 = vmax.f32 %v2446_v6, %v2447_v31  ;;  %v2460_v13 = vmax.f32 %v2458_v4, %v2459_v38 }
 0x360   : > { %v2471_v36 = vcombine.low %v2442_v7, %v2448_v34  ;;  %v2472_v48 = vcombine.low %v2454_v39, %v2460_v13 }
 0x362   : > { %v2493_v42 = vrot.slane %v2471_v36, %v3667_v44  ;;  %v2500_v43 = vrot.slane %v2472_v48, %v3667_v44 }
 0x364   : > { %v2502_v28 = vcombine.low %v2493_v42, %v2500_v43 }
 0x366   : > { %v2516_v14 = vrot.slane %v2502_v28, %v3667_v44 }
 0x368   : > { %v2517_v23 = vcombine.low %v2509_v45, %v2516_v14 }
 0x36a   : > { %2519 = vst [vmem:[%s323_s22] sm:$0xff] %v2517_v23 }
 0x36b   : > { %3026 = shalt.err (!%p3023_p3)
}
 0x36c   : > { %s3027_s18 = scalar_lea.hbm %s2535_s10, 128  ;;  %s3031_s21 = scalar_lea.hbm %s3940_s7, 256 }
 0x36d   : > { %p3028_p5 = scmp.ne.s32.totalorder %s2535_s10, %s3027_s18  ;;  %p3032_p9 = scmp.lt.s32.totalorder %s2535_s10, %s3940_s7 }
 0x36e   : > { %p3033_p12 = scmp.lt.s32.totalorder %s3031_s21, %s3027_s18 }
 0x36f   : > { %p3029_p6 = pnand %p3028_p5, %p3183_p4 }
 0x370   : > { %p3034_p10 = por %p3033_p12, %p3032_p9 }
 0x371   : > { %p3030_p7 = pneg %p3029_p6 }
 0x373   : > { %p3035_p11 = pnand %p3034_p10, %p3030_p7 }
 0x375   : > { %3038 = shalt.err (!%p3035_p11)
}
 0x376   : > { %2902 = dma.vmem_to_hbm [thread:$0]  (%p3183_p4), %s2538_s23, 128, %s2535_s10, %s2521_s12  }
 0x377 PF: > { %p2914_p13 = scmp.ge.s32.totalorder %s3093_s29, 2  ;;  %s2549_s8 = sand.u32 1, %s3073_s24  }
 0x378   : > { %s2550_s15 = scalar_lea.sflag [#allocation5], %s2549_s8 }
 0x379   : > { %p2909_p0 = pnand %p2914_p13, %p3190_p8 }
 0x37b   : > { %p2910_p1 = pneg %p2909_p0 }
 0x37d   : > { %3068 = dma.done.wait (%p2910_p1), %s2550_s15, 128  }
 0x37e   : > { %3070 = vsyncadd (%p2910_p1), %s2550_s15, 4294967168  ;;  %s21_s29 = sadd.s32 1, %s3093_s29   ;;  %s3945_s24 = smov %s3077_s25 }
 0x37f   : > { %p18_p2 = scmp.ge.s32.totalorder %s21_s29, 4   ;;  %s3946_s25 = smov %s3081_s26 }
 0x380   : > { %s3947_s26 = smov %s3196_s14  ;;  %s3948_s27 = smov %s3089_s28 }
 0x381   : > { %s3949_s28 = smov %s3951_s9  ;;  %20 = sbr.rel (!%p18_p2) target bundleno = 5 (0x5), region = 96 }
 0x386   :  { %2555 = vsyncpa [#allocation4], 1 }
 0x387   :  { %2557 = vsyncpa [#allocation4 + $0x1], 1 }
 0x388   :  { %2558 = vsyncpa [#allocation5], 1 }
 0x389   :  { %2560 = vsyncpa [#allocation5 + $0x1], 1 }

</bundles_post_ra>
